<compile_context>
chip_gen: v5e
topology: v5e:2x2
jax: 0.10.0
libtpu: 0.0.40
codegen_flags: <defaults>
</compile_context>

<pallas_src>
import numpy as np
import jax
import jax.numpy as jnp
from jax.experimental import pallas as pl
from jax.experimental.pallas import tpu as pltpu


# ----------------------------- LeNet geometry ------------------------------
K = 5
H0 = W0 = 28                       # input 1x28x28 (required by fc1 = 16*4*4)
C1, C2 = 6, 16
H1, W1 = H0 - K + 1, W0 - K + 1    # 24, 24  (conv1 out)
H1P, W1P = H1 // 2, W1 // 2        # 12, 12  (pool1 out)
H2, W2 = H1P - K + 1, W1P - K + 1  # 8, 8    (conv2 out)
H2P, W2P = H2 // 2, W2 // 2        # 4, 4    (pool2 out)
FC1, FC2, FC3 = 120, 84, 10


# ------------------------------ fused kernel -------------------------------
def _lenet_kernel(x_ref, w1_ref, b1_ref, w2_ref, b2_ref,
                  r1_ref, c1_ref, r2_ref, c2_ref,
                  fw1_ref, fb1_ref, fw2_ref, fb2_ref, fw3_ref, fb3_ref,
                  o_ref):
    f32 = jnp.float32
    x = x_ref[...]                                                  # (28, 28)

    # conv1 + bias + relu : output (24, 24*6), lane index = j*C1 + co
    acc = jnp.dot(x[0:H1, :], w1_ref[0], preferred_element_type=f32)
    for di in range(1, K):
        acc = acc + jnp.dot(x[di:di + H1, :], w1_ref[di],
                            preferred_element_type=f32)
    y1 = jnp.maximum(acc + b1_ref[...], 0.0)                        # (24, 144)

    # 2x2 maxpool via 0/1 selection matmuls (rows then columns)
    rows = jnp.maximum(jnp.dot(r1_ref[0], y1, preferred_element_type=f32),
                       jnp.dot(r1_ref[1], y1, preferred_element_type=f32))
    p1 = jnp.maximum(jnp.dot(rows, c1_ref[0], preferred_element_type=f32),
                     jnp.dot(rows, c1_ref[1], preferred_element_type=f32))
    # p1: (12, 12*6)

    # conv2 + bias + relu : output (8, 8*16), lane index = j*C2 + co
    acc2 = jnp.dot(p1[0:H2, :], w2_ref[0], preferred_element_type=f32)
    for di in range(1, K):
        acc2 = acc2 + jnp.dot(p1[di:di + H2, :], w2_ref[di],
                              preferred_element_type=f32)
    y2 = jnp.maximum(acc2 + b2_ref[...], 0.0)                       # (8, 128)

    # 2x2 maxpool
    rows2 = jnp.maximum(jnp.dot(r2_ref[0], y2, preferred_element_type=f32),
                        jnp.dot(r2_ref[1], y2, preferred_element_type=f32))
    p2 = jnp.maximum(jnp.dot(rows2, c2_ref[0], preferred_element_type=f32),
                     jnp.dot(rows2, c2_ref[1], preferred_element_type=f32))
    # p2: (4, 4*16)

    # fc1: PyTorch flatten order folded into the weight; accumulate per row.
    h = fb1_ref[...]                                                # (1, 120)
    for i in range(H2P):
        h = h + jnp.dot(p2[i:i + 1, :], fw1_ref[i],
                        preferred_element_type=f32)
    h = jnp.maximum(h, 0.0)

    # fc2 + relu, fc3
    h = jnp.maximum(jnp.dot(h, fw2_ref[...], preferred_element_type=f32)
                    + fb2_ref[...], 0.0)
    logits = jnp.dot(h, fw3_ref[...], preferred_element_type=f32) + fb3_ref[...]
    o_ref[...] = logits                                             # (1, 10)


# ---------------------- one-time parameter preparation ----------------------
def _shift_mats(k, w_in, w_out):
    """Shift[dj, jx, j] = 1 if jx == j + dj."""
    s = np.zeros((k, w_in, w_out), np.float32)
    for dj in range(k):
        for j in range(w_out):
            s[dj, j + dj, j] = 1.0
    return s


def _pool_select_mats(h, w, c):
    """Row/col 0-1 selection matrices for 2x2 maxpool in (rows, w*c) layout."""
    rows = np.zeros((2, h // 2, h), np.float32)
    for p in range(2):
        for i in range(h // 2):
            rows[p, i, 2 * i + p] = 1.0
    sel = np.zeros((2, w, w // 2), np.float32)
    for p in range(2):
        for j in range(w // 2):
            sel[p, 2 * j + p, j] = 1.0
    cols = np.stack([np.kron(sel[p], np.eye(c, dtype=np.float32))
                     for p in range(2)])
    return jnp.asarray(rows), jnp.asarray(cols)


def prepare_params(params):
    """Fold im2col / flatten permutation into the weights (one-time cost)."""
    (w1, b1, w2, b2, fw1, fb1, fw2, fb2, fw3, fb3) = params

    # conv1: banded weight slab per row-offset di: (K, W0, W1*C1)
    s1 = jnp.asarray(_shift_mats(K, W0, W1))
    w1s = jnp.einsum('dxj,oid->ixjo', s1, w1[:, 0]).reshape(K, W0, W1 * C1)
    b1t = jnp.tile(b1, W1).reshape(1, W1 * C1)

    # conv2: (K, W1P*C1, W2*C2)
    s2 = jnp.asarray(_shift_mats(K, W1P, W2))
    w2s = jnp.einsum('dxj,ocid->ixcjo', s2, w2).reshape(K, W1P * C1, W2 * C2)
    b2t = jnp.tile(b2, W2).reshape(1, W2 * C2)

    # maxpool selection matrices
    r1, c1m = _pool_select_mats(H1, W1, C1)     # (2,12,24), (2,144,72)
    r2, c2m = _pool_select_mats(H2, W2, C2)     # (2,4,8),   (2,128,64)

    # fc1: fold the (c, i, j) PyTorch flatten into an (i, j, c) ordered weight,
    # split per pooled-feature row i -> (H2P, W2P*C2, FC1)
    fw1p = (fw1.reshape(FC1, C2, H2P, W2P)
               .transpose(2, 3, 1, 0)
               .reshape(H2P, W2P * C2, FC1))

    return (w1s, b1t, w2s, b2t, r1, c1m, r2, c2m,
            fw1p, fb1.reshape(1, FC1),
            fw2.T, fb2.reshape(1, FC2),
            fw3.T, fb3.reshape(1, FC3))


# --------------------------------- wrapper ----------------------------------
def lenet_forward(x, prep):
    consts = prep
    n = x.shape[0]
    x2d = x.reshape(n, H0, W0)      # Cin == 1, free reshape

    def full_spec(a):
        nd = a.ndim
        return pl.BlockSpec(a.shape, lambda i, _nd=nd: (0,) * _nd)

    out = pl.pallas_call(
        _lenet_kernel,
        out_shape=jax.ShapeDtypeStruct((n, 1, FC3), jnp.float32),
        grid=(n,),
        in_specs=[pl.BlockSpec((None, H0, W0), lambda i: (i, 0, 0))]
                 + [full_spec(a) for a in consts],
        out_specs=pl.BlockSpec((None, 1, FC3), lambda i: (i, 0, 0)),
        compiler_params=pltpu.CompilerParams(
            dimension_semantics=("parallel",)),   # splits batch over v7x's 2 TCs
    )(x2d, *consts)
    return out.reshape(n, FC3)


# --------------------------- params & reference -----------------------------
def init_params(key):
    def u(k, shape, fan_in):
        bound = 1.0 / (fan_in ** 0.5)
        return jax.random.uniform(k, shape, jnp.float32, -bound, bound)

    ks = jax.random.split(key, 10)
    w1 = u(ks[0], (6, 1, 5, 5), 1 * 25);    b1 = u(ks[1], (6,), 1 * 25)
    w2 = u(ks[2], (16, 6, 5, 5), 6 * 25);   b2 = u(ks[3], (16,), 6 * 25)
    fw1 = u(ks[4], (120, 256), 256);        fb1 = u(ks[5], (120,), 256)
    fw2 = u(ks[6], (84, 120), 120);         fb2 = u(ks[7], (84,), 120)
    fw3 = u(ks[8], (10, 84), 84);           fb3 = u(ks[9], (10,), 84)
    return (w1, b1, w2, b2, fw1, fb1, fw2, fb2, fw3, fb3)


def ref_forward(x, params):
    (w1, b1, w2, b2, fw1, fb1, fw2, fb2, fw3, fb3) = params
    dn = ('NCHW', 'OIHW', 'NCHW')

    def pool(y):
        return jax.lax.reduce_window(y, -jnp.inf, jax.lax.max,
                                     (1, 1, 2, 2), (1, 1, 2, 2), 'VALID')

    y = jax.lax.conv_general_dilated(x, w1, (1, 1), 'VALID', dimension_numbers=dn)
    y = pool(jnp.maximum(y + b1[None, :, None, None], 0.0))
    y = jax.lax.conv_general_dilated(y, w2, (1, 1), 'VALID', dimension_numbers=dn)
    y = pool(jnp.maximum(y + b2[None, :, None, None], 0.0))
    f = y.reshape(y.shape[0], -1)
    f = jnp.maximum(f @ fw1.T + fb1, 0.0)
    f = jnp.maximum(f @ fw2.T + fb2, 0.0)
    return f @ fw3.T + fb3


if __name__ == "__main__":
    key = jax.random.PRNGKey(0)
    kx, kp = jax.random.split(key)
    # LeNet geometry (fc1 = 16*4*4) requires 28x28 single-channel input.
    x = jax.random.normal(kx, (2, 1, 28, 28), jnp.float32)
    params = init_params(kp)

    prep = prepare_params(params)               # one-time weight preprocessing
    fwd = jax.jit(lenet_forward)

    out = fwd(x, prep)
    out = jax.block_until_ready(out)
    assert out.shape == (2, 10)

    ref = ref_forward(x, params)
    np.testing.assert_allclose(np.asarray(out), np.asarray(ref),
                               rtol=1e-2, atol=1e-2)
    print("KERNEL_OK")
</pallas_src>

<mosaic_0001>
module attributes {stable_mosaic.version = 11 : i64} {
  func.func @_lenet_kernel(%arg0: i32, %arg1: memref<1x28x28xf32, #tpu.memory_space<vmem>>, %arg2: memref<5x28x144xf32, #tpu.memory_space<vmem>>, %arg3: memref<1x144xf32, #tpu.memory_space<vmem>>, %arg4: memref<5x72x128xf32, #tpu.memory_space<vmem>>, %arg5: memref<1x128xf32, #tpu.memory_space<vmem>>, %arg6: memref<2x12x24xf32, #tpu.memory_space<vmem>>, %arg7: memref<2x144x72xf32, #tpu.memory_space<vmem>>, %arg8: memref<2x4x8xf32, #tpu.memory_space<vmem>>, %arg9: memref<2x128x64xf32, #tpu.memory_space<vmem>>, %arg10: memref<4x64x120xf32, #tpu.memory_space<vmem>>, %arg11: memref<1x120xf32, #tpu.memory_space<vmem>>, %arg12: memref<120x84xf32, #tpu.memory_space<vmem>>, %arg13: memref<1x84xf32, #tpu.memory_space<vmem>>, %arg14: memref<84x10xf32, #tpu.memory_space<vmem>>, %arg15: memref<1x10xf32, #tpu.memory_space<vmem>>, %arg16: memref<1x1x10xf32, #tpu.memory_space<vmem>>) attributes {dimension_semantics = [#tpu.dimension_semantics<parallel>], iteration_bounds = array<i64: 2>, scalar_prefetch = 0 : i64, scratch_operands = 0 : i64, tpu.core_type = #tpu.core_type<tc>, window_params = [{transform_indices = @transform_0, window_bounds = array<i64: 1, 28, 28>}, {pipeline_mode = #tpu.pipeline_mode<synchronous>, transform_indices = @transform_1, window_bounds = array<i64: 5, 28, 144>}, {pipeline_mode = #tpu.pipeline_mode<synchronous>, transform_indices = @transform_2, window_bounds = array<i64: 1, 144>}, {pipeline_mode = #tpu.pipeline_mode<synchronous>, transform_indices = @transform_3, window_bounds = array<i64: 5, 72, 128>}, {pipeline_mode = #tpu.pipeline_mode<synchronous>, transform_indices = @transform_4, window_bounds = array<i64: 1, 128>}, {pipeline_mode = #tpu.pipeline_mode<synchronous>, transform_indices = @transform_5, window_bounds = array<i64: 2, 12, 24>}, {pipeline_mode = #tpu.pipeline_mode<synchronous>, transform_indices = @transform_6, window_bounds = array<i64: 2, 144, 72>}, {pipeline_mode = #tpu.pipeline_mode<synchronous>, transform_indices = @transform_7, window_bounds = array<i64: 2, 4, 8>}, {pipeline_mode = #tpu.pipeline_mode<synchronous>, transform_indices = @transform_8, window_bounds = array<i64: 2, 128, 64>}, {pipeline_mode = #tpu.pipeline_mode<synchronous>, transform_indices = @transform_9, window_bounds = array<i64: 4, 64, 120>}, {pipeline_mode = #tpu.pipeline_mode<synchronous>, transform_indices = @transform_10, window_bounds = array<i64: 1, 120>}, {pipeline_mode = #tpu.pipeline_mode<synchronous>, transform_indices = @transform_11, window_bounds = array<i64: 120, 84>}, {pipeline_mode = #tpu.pipeline_mode<synchronous>, transform_indices = @transform_12, window_bounds = array<i64: 1, 84>}, {pipeline_mode = #tpu.pipeline_mode<synchronous>, transform_indices = @transform_13, window_bounds = array<i64: 84, 10>}, {pipeline_mode = #tpu.pipeline_mode<synchronous>, transform_indices = @transform_14, window_bounds = array<i64: 1, 10>}, {transform_indices = @transform_15, window_bounds = array<i64: 1, 1, 10>}]} {
    %c0 = arith.constant 0 : index
    %c0_0 = arith.constant 0 : index
    %c0_1 = arith.constant 0 : index
    %0 = vector.load %arg1[%c0, %c0_0, %c0_1] : memref<1x28x28xf32, #tpu.memory_space<vmem>>, vector<1x28x28xf32>
    %1 = vector.shape_cast %0 : vector<1x28x28xf32> to vector<28x28xf32>
    %2 = vector.extract_strided_slice %1 {offsets = [0, 0], sizes = [24, 28], strides = [1, 1]} : vector<28x28xf32> to vector<24x28xf32>
    %c0_2 = arith.constant 0 : index
    %c0_3 = arith.constant 0 : index
    %c0_4 = arith.constant 0 : index
    %3 = vector.load %arg2[%c0_2, %c0_3, %c0_4] : memref<5x28x144xf32, #tpu.memory_space<vmem>>, vector<1x28x144xf32>
    %4 = vector.shape_cast %3 : vector<1x28x144xf32> to vector<28x144xf32>
    %cst = arith.constant dense<0.000000e+00> : vector<24x144xf32>
    %5 = tpu.matmul %2, %4, %cst {dimension_numbers = #tpu.dot_dimension_numbers<[1], [0], [0], [1], [0, 0, 1, 1], [], []>} : vector<24x28xf32>, vector<28x144xf32>, vector<24x144xf32> -> vector<24x144xf32>
    %6 = vector.extract_strided_slice %1 {offsets = [1, 0], sizes = [24, 28], strides = [1, 1]} : vector<28x28xf32> to vector<24x28xf32>
    %c1 = arith.constant 1 : index
    %c0_5 = arith.constant 0 : index
    %c0_6 = arith.constant 0 : index
    %7 = vector.load %arg2[%c1, %c0_5, %c0_6] : memref<5x28x144xf32, #tpu.memory_space<vmem>>, vector<1x28x144xf32>
    %8 = vector.shape_cast %7 : vector<1x28x144xf32> to vector<28x144xf32>
    %cst_7 = arith.constant dense<0.000000e+00> : vector<24x144xf32>
    %9 = tpu.matmul %6, %8, %cst_7 {dimension_numbers = #tpu.dot_dimension_numbers<[1], [0], [0], [1], [0, 0, 1, 1], [], []>} : vector<24x28xf32>, vector<28x144xf32>, vector<24x144xf32> -> vector<24x144xf32>
    %10 = arith.addf %5, %9 : vector<24x144xf32>
    %11 = vector.extract_strided_slice %1 {offsets = [2, 0], sizes = [24, 28], strides = [1, 1]} : vector<28x28xf32> to vector<24x28xf32>
    %c2 = arith.constant 2 : index
    %c0_8 = arith.constant 0 : index
    %c0_9 = arith.constant 0 : index
    %12 = vector.load %arg2[%c2, %c0_8, %c0_9] : memref<5x28x144xf32, #tpu.memory_space<vmem>>, vector<1x28x144xf32>
    %13 = vector.shape_cast %12 : vector<1x28x144xf32> to vector<28x144xf32>
    %cst_10 = arith.constant dense<0.000000e+00> : vector<24x144xf32>
    %14 = tpu.matmul %11, %13, %cst_10 {dimension_numbers = #tpu.dot_dimension_numbers<[1], [0], [0], [1], [0, 0, 1, 1], [], []>} : vector<24x28xf32>, vector<28x144xf32>, vector<24x144xf32> -> vector<24x144xf32>
    %15 = arith.addf %10, %14 : vector<24x144xf32>
    %16 = vector.extract_strided_slice %1 {offsets = [3, 0], sizes = [24, 28], strides = [1, 1]} : vector<28x28xf32> to vector<24x28xf32>
    %c3 = arith.constant 3 : index
    %c0_11 = arith.constant 0 : index
    %c0_12 = arith.constant 0 : index
    %17 = vector.load %arg2[%c3, %c0_11, %c0_12] : memref<5x28x144xf32, #tpu.memory_space<vmem>>, vector<1x28x144xf32>
    %18 = vector.shape_cast %17 : vector<1x28x144xf32> to vector<28x144xf32>
    %cst_13 = arith.constant dense<0.000000e+00> : vector<24x144xf32>
    %19 = tpu.matmul %16, %18, %cst_13 {dimension_numbers = #tpu.dot_dimension_numbers<[1], [0], [0], [1], [0, 0, 1, 1], [], []>} : vector<24x28xf32>, vector<28x144xf32>, vector<24x144xf32> -> vector<24x144xf32>
    %20 = arith.addf %15, %19 : vector<24x144xf32>
    %21 = vector.extract_strided_slice %1 {offsets = [4, 0], sizes = [24, 28], strides = [1, 1]} : vector<28x28xf32> to vector<24x28xf32>
    %c4 = arith.constant 4 : index
    %c0_14 = arith.constant 0 : index
    %c0_15 = arith.constant 0 : index
    %22 = vector.load %arg2[%c4, %c0_14, %c0_15] : memref<5x28x144xf32, #tpu.memory_space<vmem>>, vector<1x28x144xf32>
    %23 = vector.shape_cast %22 : vector<1x28x144xf32> to vector<28x144xf32>
    %cst_16 = arith.constant dense<0.000000e+00> : vector<24x144xf32>
    %24 = tpu.matmul %21, %23, %cst_16 {dimension_numbers = #tpu.dot_dimension_numbers<[1], [0], [0], [1], [0, 0, 1, 1], [], []>} : vector<24x28xf32>, vector<28x144xf32>, vector<24x144xf32> -> vector<24x144xf32>
    %25 = arith.addf %20, %24 : vector<24x144xf32>
    %c0_17 = arith.constant 0 : index
    %c0_18 = arith.constant 0 : index
    %26 = vector.load %arg3[%c0_17, %c0_18] : memref<1x144xf32, #tpu.memory_space<vmem>>, vector<1x144xf32>
    %27 = vector.broadcast %26 : vector<1x144xf32> to vector<24x144xf32>
    %28 = arith.addf %25, %27 : vector<24x144xf32>
    %cst_19 = arith.constant 0.000000e+00 : f32
    %29 = vector.broadcast %cst_19 : f32 to vector<24x144xf32>
    %30 = arith.maximumf %28, %29 : vector<24x144xf32>
    %c0_20 = arith.constant 0 : index
    %c0_21 = arith.constant 0 : index
    %c0_22 = arith.constant 0 : index
    %31 = vector.load %arg6[%c0_20, %c0_21, %c0_22] : memref<2x12x24xf32, #tpu.memory_space<vmem>>, vector<1x12x24xf32>
    %32 = vector.shape_cast %31 : vector<1x12x24xf32> to vector<12x24xf32>
    %cst_23 = arith.constant dense<0.000000e+00> : vector<12x144xf32>
    %33 = tpu.matmul %32, %30, %cst_23 {dimension_numbers = #tpu.dot_dimension_numbers<[1], [0], [0], [1], [0, 0, 1, 1], [], []>} : vector<12x24xf32>, vector<24x144xf32>, vector<12x144xf32> -> vector<12x144xf32>
    %c1_24 = arith.constant 1 : index
    %c0_25 = arith.constant 0 : index
    %c0_26 = arith.constant 0 : index
    %34 = vector.load %arg6[%c1_24, %c0_25, %c0_26] : memref<2x12x24xf32, #tpu.memory_space<vmem>>, vector<1x12x24xf32>
    %35 = vector.shape_cast %34 : vector<1x12x24xf32> to vector<12x24xf32>
    %cst_27 = arith.constant dense<0.000000e+00> : vector<12x144xf32>
    %36 = tpu.matmul %35, %30, %cst_27 {dimension_numbers = #tpu.dot_dimension_numbers<[1], [0], [0], [1], [0, 0, 1, 1], [], []>} : vector<12x24xf32>, vector<24x144xf32>, vector<12x144xf32> -> vector<12x144xf32>
    %37 = arith.maximumf %33, %36 : vector<12x144xf32>
    %c0_28 = arith.constant 0 : index
    %c0_29 = arith.constant 0 : index
    %c0_30 = arith.constant 0 : index
    %38 = vector.load %arg7[%c0_28, %c0_29, %c0_30] : memref<2x144x72xf32, #tpu.memory_space<vmem>>, vector<1x144x72xf32>
    %39 = vector.shape_cast %38 : vector<1x144x72xf32> to vector<144x72xf32>
    %cst_31 = arith.constant dense<0.000000e+00> : vector<12x72xf32>
    %40 = tpu.matmul %37, %39, %cst_31 {dimension_numbers = #tpu.dot_dimension_numbers<[1], [0], [0], [1], [0, 0, 1, 1], [], []>} : vector<12x144xf32>, vector<144x72xf32>, vector<12x72xf32> -> vector<12x72xf32>
    %c1_32 = arith.constant 1 : index
    %c0_33 = arith.constant 0 : index
    %c0_34 = arith.constant 0 : index
    %41 = vector.load %arg7[%c1_32, %c0_33, %c0_34] : memref<2x144x72xf32, #tpu.memory_space<vmem>>, vector<1x144x72xf32>
    %42 = vector.shape_cast %41 : vector<1x144x72xf32> to vector<144x72xf32>
    %cst_35 = arith.constant dense<0.000000e+00> : vector<12x72xf32>
    %43 = tpu.matmul %37, %42, %cst_35 {dimension_numbers = #tpu.dot_dimension_numbers<[1], [0], [0], [1], [0, 0, 1, 1], [], []>} : vector<12x144xf32>, vector<144x72xf32>, vector<12x72xf32> -> vector<12x72xf32>
    %44 = arith.maximumf %40, %43 : vector<12x72xf32>
    %45 = vector.extract_strided_slice %44 {offsets = [0, 0], sizes = [8, 72], strides = [1, 1]} : vector<12x72xf32> to vector<8x72xf32>
    %c0_36 = arith.constant 0 : index
    %c0_37 = arith.constant 0 : index
    %c0_38 = arith.constant 0 : index
    %46 = vector.load %arg4[%c0_36, %c0_37, %c0_38] : memref<5x72x128xf32, #tpu.memory_space<vmem>>, vector<1x72x128xf32>
    %47 = vector.shape_cast %46 : vector<1x72x128xf32> to vector<72x128xf32>
    %cst_39 = arith.constant dense<0.000000e+00> : vector<8x128xf32>
    %48 = tpu.matmul %45, %47, %cst_39 {dimension_numbers = #tpu.dot_dimension_numbers<[1], [0], [0], [1], [0, 0, 1, 1], [], []>} : vector<8x72xf32>, vector<72x128xf32>, vector<8x128xf32> -> vector<8x128xf32>
    %49 = vector.extract_strided_slice %44 {offsets = [1, 0], sizes = [8, 72], strides = [1, 1]} : vector<12x72xf32> to vector<8x72xf32>
    %c1_40 = arith.constant 1 : index
    %c0_41 = arith.constant 0 : index
    %c0_42 = arith.constant 0 : index
    %50 = vector.load %arg4[%c1_40, %c0_41, %c0_42] : memref<5x72x128xf32, #tpu.memory_space<vmem>>, vector<1x72x128xf32>
    %51 = vector.shape_cast %50 : vector<1x72x128xf32> to vector<72x128xf32>
    %cst_43 = arith.constant dense<0.000000e+00> : vector<8x128xf32>
    %52 = tpu.matmul %49, %51, %cst_43 {dimension_numbers = #tpu.dot_dimension_numbers<[1], [0], [0], [1], [0, 0, 1, 1], [], []>} : vector<8x72xf32>, vector<72x128xf32>, vector<8x128xf32> -> vector<8x128xf32>
    %53 = arith.addf %48, %52 : vector<8x128xf32>
    %54 = vector.extract_strided_slice %44 {offsets = [2, 0], sizes = [8, 72], strides = [1, 1]} : vector<12x72xf32> to vector<8x72xf32>
    %c2_44 = arith.constant 2 : index
    %c0_45 = arith.constant 0 : index
    %c0_46 = arith.constant 0 : index
    %55 = vector.load %arg4[%c2_44, %c0_45, %c0_46] : memref<5x72x128xf32, #tpu.memory_space<vmem>>, vector<1x72x128xf32>
    %56 = vector.shape_cast %55 : vector<1x72x128xf32> to vector<72x128xf32>
    %cst_47 = arith.constant dense<0.000000e+00> : vector<8x128xf32>
    %57 = tpu.matmul %54, %56, %cst_47 {dimension_numbers = #tpu.dot_dimension_numbers<[1], [0], [0], [1], [0, 0, 1, 1], [], []>} : vector<8x72xf32>, vector<72x128xf32>, vector<8x128xf32> -> vector<8x128xf32>
    %58 = arith.addf %53, %57 : vector<8x128xf32>
    %59 = vector.extract_strided_slice %44 {offsets = [3, 0], sizes = [8, 72], strides = [1, 1]} : vector<12x72xf32> to vector<8x72xf32>
    %c3_48 = arith.constant 3 : index
    %c0_49 = arith.constant 0 : index
    %c0_50 = arith.constant 0 : index
    %60 = vector.load %arg4[%c3_48, %c0_49, %c0_50] : memref<5x72x128xf32, #tpu.memory_space<vmem>>, vector<1x72x128xf32>
    %61 = vector.shape_cast %60 : vector<1x72x128xf32> to vector<72x128xf32>
    %cst_51 = arith.constant dense<0.000000e+00> : vector<8x128xf32>
    %62 = tpu.matmul %59, %61, %cst_51 {dimension_numbers = #tpu.dot_dimension_numbers<[1], [0], [0], [1], [0, 0, 1, 1], [], []>} : vector<8x72xf32>, vector<72x128xf32>, vector<8x128xf32> -> vector<8x128xf32>
    %63 = arith.addf %58, %62 : vector<8x128xf32>
    %64 = vector.extract_strided_slice %44 {offsets = [4, 0], sizes = [8, 72], strides = [1, 1]} : vector<12x72xf32> to vector<8x72xf32>
    %c4_52 = arith.constant 4 : index
    %c0_53 = arith.constant 0 : index
    %c0_54 = arith.constant 0 : index
    %65 = vector.load %arg4[%c4_52, %c0_53, %c0_54] : memref<5x72x128xf32, #tpu.memory_space<vmem>>, vector<1x72x128xf32>
    %66 = vector.shape_cast %65 : vector<1x72x128xf32> to vector<72x128xf32>
    %cst_55 = arith.constant dense<0.000000e+00> : vector<8x128xf32>
    %67 = tpu.matmul %64, %66, %cst_55 {dimension_numbers = #tpu.dot_dimension_numbers<[1], [0], [0], [1], [0, 0, 1, 1], [], []>} : vector<8x72xf32>, vector<72x128xf32>, vector<8x128xf32> -> vector<8x128xf32>
    %68 = arith.addf %63, %67 : vector<8x128xf32>
    %c0_56 = arith.constant 0 : index
    %c0_57 = arith.constant 0 : index
    %69 = vector.load %arg5[%c0_56, %c0_57] : memref<1x128xf32, #tpu.memory_space<vmem>>, vector<1x128xf32>
    %70 = vector.broadcast %69 : vector<1x128xf32> to vector<8x128xf32>
    %71 = arith.addf %68, %70 : vector<8x128xf32>
    %cst_58 = arith.constant 0.000000e+00 : f32
    %72 = vector.broadcast %cst_58 : f32 to vector<8x128xf32>
    %73 = arith.maximumf %71, %72 : vector<8x128xf32>
    %c0_59 = arith.constant 0 : index
    %c0_60 = arith.constant 0 : index
    %c0_61 = arith.constant 0 : index
    %74 = vector.load %arg8[%c0_59, %c0_60, %c0_61] : memref<2x4x8xf32, #tpu.memory_space<vmem>>, vector<1x4x8xf32>
    %75 = vector.shape_cast %74 : vector<1x4x8xf32> to vector<4x8xf32>
    %cst_62 = arith.constant dense<0.000000e+00> : vector<4x128xf32>
    %76 = tpu.matmul %75, %73, %cst_62 {dimension_numbers = #tpu.dot_dimension_numbers<[1], [0], [0], [1], [0, 0, 1, 1], [], []>} : vector<4x8xf32>, vector<8x128xf32>, vector<4x128xf32> -> vector<4x128xf32>
    %c1_63 = arith.constant 1 : index
    %c0_64 = arith.constant 0 : index
    %c0_65 = arith.constant 0 : index
    %77 = vector.load %arg8[%c1_63, %c0_64, %c0_65] : memref<2x4x8xf32, #tpu.memory_space<vmem>>, vector<1x4x8xf32>
    %78 = vector.shape_cast %77 : vector<1x4x8xf32> to vector<4x8xf32>
    %cst_66 = arith.constant dense<0.000000e+00> : vector<4x128xf32>
    %79 = tpu.matmul %78, %73, %cst_66 {dimension_numbers = #tpu.dot_dimension_numbers<[1], [0], [0], [1], [0, 0, 1, 1], [], []>} : vector<4x8xf32>, vector<8x128xf32>, vector<4x128xf32> -> vector<4x128xf32>
    %80 = arith.maximumf %76, %79 : vector<4x128xf32>
    %c0_67 = arith.constant 0 : index
    %c0_68 = arith.constant 0 : index
    %c0_69 = arith.constant 0 : index
    %81 = vector.load %arg9[%c0_67, %c0_68, %c0_69] : memref<2x128x64xf32, #tpu.memory_space<vmem>>, vector<1x128x64xf32>
    %82 = vector.shape_cast %81 : vector<1x128x64xf32> to vector<128x64xf32>
    %cst_70 = arith.constant dense<0.000000e+00> : vector<4x64xf32>
    %83 = tpu.matmul %80, %82, %cst_70 {dimension_numbers = #tpu.dot_dimension_numbers<[1], [0], [0], [1], [0, 0, 1, 1], [], []>} : vector<4x128xf32>, vector<128x64xf32>, vector<4x64xf32> -> vector<4x64xf32>
    %c1_71 = arith.constant 1 : index
    %c0_72 = arith.constant 0 : index
    %c0_73 = arith.constant 0 : index
    %84 = vector.load %arg9[%c1_71, %c0_72, %c0_73] : memref<2x128x64xf32, #tpu.memory_space<vmem>>, vector<1x128x64xf32>
    %85 = vector.shape_cast %84 : vector<1x128x64xf32> to vector<128x64xf32>
    %cst_74 = arith.constant dense<0.000000e+00> : vector<4x64xf32>
    %86 = tpu.matmul %80, %85, %cst_74 {dimension_numbers = #tpu.dot_dimension_numbers<[1], [0], [0], [1], [0, 0, 1, 1], [], []>} : vector<4x128xf32>, vector<128x64xf32>, vector<4x64xf32> -> vector<4x64xf32>
    %87 = arith.maximumf %83, %86 : vector<4x64xf32>
    %c0_75 = arith.constant 0 : index
    %c0_76 = arith.constant 0 : index
    %88 = vector.load %arg11[%c0_75, %c0_76] : memref<1x120xf32, #tpu.memory_space<vmem>>, vector<1x120xf32>
    %89 = vector.extract_strided_slice %87 {offsets = [0, 0], sizes = [1, 64], strides = [1, 1]} : vector<4x64xf32> to vector<1x64xf32>
    %c0_77 = arith.constant 0 : index
    %c0_78 = arith.constant 0 : index
    %c0_79 = arith.constant 0 : index
    %90 = vector.load %arg10[%c0_77, %c0_78, %c0_79] : memref<4x64x120xf32, #tpu.memory_space<vmem>>, vector<1x64x120xf32>
    %91 = vector.shape_cast %90 : vector<1x64x120xf32> to vector<64x120xf32>
    %cst_80 = arith.constant dense<0.000000e+00> : vector<1x120xf32>
    %92 = tpu.matmul %89, %91, %cst_80 {dimension_numbers = #tpu.dot_dimension_numbers<[1], [0], [0], [1], [0, 0, 1, 1], [], []>} : vector<1x64xf32>, vector<64x120xf32>, vector<1x120xf32> -> vector<1x120xf32>
    %93 = arith.addf %88, %92 : vector<1x120xf32>
    %94 = vector.extract_strided_slice %87 {offsets = [1, 0], sizes = [1, 64], strides = [1, 1]} : vector<4x64xf32> to vector<1x64xf32>
    %c1_81 = arith.constant 1 : index
    %c0_82 = arith.constant 0 : index
    %c0_83 = arith.constant 0 : index
    %95 = vector.load %arg10[%c1_81, %c0_82, %c0_83] : memref<4x64x120xf32, #tpu.memory_space<vmem>>, vector<1x64x120xf32>
    %96 = vector.shape_cast %95 : vector<1x64x120xf32> to vector<64x120xf32>
    %cst_84 = arith.constant dense<0.000000e+00> : vector<1x120xf32>
    %97 = tpu.matmul %94, %96, %cst_84 {dimension_numbers = #tpu.dot_dimension_numbers<[1], [0], [0], [1], [0, 0, 1, 1], [], []>} : vector<1x64xf32>, vector<64x120xf32>, vector<1x120xf32> -> vector<1x120xf32>
    %98 = arith.addf %93, %97 : vector<1x120xf32>
    %99 = vector.extract_strided_slice %87 {offsets = [2, 0], sizes = [1, 64], strides = [1, 1]} : vector<4x64xf32> to vector<1x64xf32>
    %c2_85 = arith.constant 2 : index
    %c0_86 = arith.constant 0 : index
    %c0_87 = arith.constant 0 : index
    %100 = vector.load %arg10[%c2_85, %c0_86, %c0_87] : memref<4x64x120xf32, #tpu.memory_space<vmem>>, vector<1x64x120xf32>
    %101 = vector.shape_cast %100 : vector<1x64x120xf32> to vector<64x120xf32>
    %cst_88 = arith.constant dense<0.000000e+00> : vector<1x120xf32>
    %102 = tpu.matmul %99, %101, %cst_88 {dimension_numbers = #tpu.dot_dimension_numbers<[1], [0], [0], [1], [0, 0, 1, 1], [], []>} : vector<1x64xf32>, vector<64x120xf32>, vector<1x120xf32> -> vector<1x120xf32>
    %103 = arith.addf %98, %102 : vector<1x120xf32>
    %104 = vector.extract_strided_slice %87 {offsets = [3, 0], sizes = [1, 64], strides = [1, 1]} : vector<4x64xf32> to vector<1x64xf32>
    %c3_89 = arith.constant 3 : index
    %c0_90 = arith.constant 0 : index
    %c0_91 = arith.constant 0 : index
    %105 = vector.load %arg10[%c3_89, %c0_90, %c0_91] : memref<4x64x120xf32, #tpu.memory_space<vmem>>, vector<1x64x120xf32>
    %106 = vector.shape_cast %105 : vector<1x64x120xf32> to vector<64x120xf32>
    %cst_92 = arith.constant dense<0.000000e+00> : vector<1x120xf32>
    %107 = tpu.matmul %104, %106, %cst_92 {dimension_numbers = #tpu.dot_dimension_numbers<[1], [0], [0], [1], [0, 0, 1, 1], [], []>} : vector<1x64xf32>, vector<64x120xf32>, vector<1x120xf32> -> vector<1x120xf32>
    %108 = arith.addf %103, %107 : vector<1x120xf32>
    %cst_93 = arith.constant 0.000000e+00 : f32
    %109 = vector.broadcast %cst_93 : f32 to vector<1x120xf32>
    %110 = arith.maximumf %108, %109 : vector<1x120xf32>
    %c0_94 = arith.constant 0 : index
    %c0_95 = arith.constant 0 : index
    %111 = vector.load %arg12[%c0_94, %c0_95] : memref<120x84xf32, #tpu.memory_space<vmem>>, vector<120x84xf32>
    %cst_96 = arith.constant dense<0.000000e+00> : vector<1x84xf32>
    %112 = tpu.matmul %110, %111, %cst_96 {dimension_numbers = #tpu.dot_dimension_numbers<[1], [0], [0], [1], [0, 0, 1, 1], [], []>} : vector<1x120xf32>, vector<120x84xf32>, vector<1x84xf32> -> vector<1x84xf32>
    %c0_97 = arith.constant 0 : index
    %c0_98 = arith.constant 0 : index
    %113 = vector.load %arg13[%c0_97, %c0_98] : memref<1x84xf32, #tpu.memory_space<vmem>>, vector<1x84xf32>
    %114 = arith.addf %112, %113 : vector<1x84xf32>
    %cst_99 = arith.constant 0.000000e+00 : f32
    %115 = vector.broadcast %cst_99 : f32 to vector<1x84xf32>
    %116 = arith.maximumf %114, %115 : vector<1x84xf32>
    %c0_100 = arith.constant 0 : index
    %c0_101 = arith.constant 0 : index
    %117 = vector.load %arg14[%c0_100, %c0_101] : memref<84x10xf32, #tpu.memory_space<vmem>>, vector<84x10xf32>
    %cst_102 = arith.constant dense<0.000000e+00> : vector<1x10xf32>
    %118 = tpu.matmul %116, %117, %cst_102 {dimension_numbers = #tpu.dot_dimension_numbers<[1], [0], [0], [1], [0, 0, 1, 1], [], []>} : vector<1x84xf32>, vector<84x10xf32>, vector<1x10xf32> -> vector<1x10xf32>
    %c0_103 = arith.constant 0 : index
    %c0_104 = arith.constant 0 : index
    %119 = vector.load %arg15[%c0_103, %c0_104] : memref<1x10xf32, #tpu.memory_space<vmem>>, vector<1x10xf32>
    %120 = arith.addf %118, %119 : vector<1x10xf32>
    %c0_105 = arith.constant 0 : index
    %c0_106 = arith.constant 0 : index
    %c0_107 = arith.constant 0 : index
    %121 = vector.load %arg16[%c0_105, %c0_106, %c0_107] : memref<1x1x10xf32, #tpu.memory_space<vmem>>, vector<1x1x10xf32>
    %122 = vector.shape_cast %121 : vector<1x1x10xf32> to vector<1x10xf32>
    %123 = vector.shape_cast %120 : vector<1x10xf32> to vector<1x1x10xf32>
    tpu.vector_store %arg16[%c0_105, %c0_106, %c0_107], %123 {strides = array<i32>} : memref<1x1x10xf32, #tpu.memory_space<vmem>>, vector<1x1x10xf32>,
    return
  }
  func.func @transform_0(%arg0: i32) -> (i32, i32, i32) {
    %c0_i32 = arith.constant 0 : i32
    %c0_i32_0 = arith.constant 0 : i32
    %c0_i32_1 = arith.constant 0 : i32
    return %arg0, %c0_i32, %c0_i32_0 : i32, i32, i32
  }
  func.func @transform_1(%arg0: i32) -> (i32, i32, i32) {
    %c0_i32 = arith.constant 0 : i32
    %c0_i32_0 = arith.constant 0 : i32
    %c0_i32_1 = arith.constant 0 : i32
    %c0_i32_2 = arith.constant 0 : i32
    return %c0_i32, %c0_i32_0, %c0_i32_1 : i32, i32, i32
  }
  func.func @transform_2(%arg0: i32) -> (i32, i32) {
    %c0_i32 = arith.constant 0 : i32
    %c0_i32_0 = arith.constant 0 : i32
    %c0_i32_1 = arith.constant 0 : i32
    return %c0_i32, %c0_i32_0 : i32, i32
  }
  func.func @transform_3(%arg0: i32) -> (i32, i32, i32) {
    %c0_i32 = arith.constant 0 : i32
    %c0_i32_0 = arith.constant 0 : i32
    %c0_i32_1 = arith.constant 0 : i32
    %c0_i32_2 = arith.constant 0 : i32
    return %c0_i32, %c0_i32_0, %c0_i32_1 : i32, i32, i32
  }
  func.func @transform_4(%arg0: i32) -> (i32, i32) {
    %c0_i32 = arith.constant 0 : i32
    %c0_i32_0 = arith.constant 0 : i32
    %c0_i32_1 = arith.constant 0 : i32
    return %c0_i32, %c0_i32_0 : i32, i32
  }
  func.func @transform_5(%arg0: i32) -> (i32, i32, i32) {
    %c0_i32 = arith.constant 0 : i32
    %c0_i32_0 = arith.constant 0 : i32
    %c0_i32_1 = arith.constant 0 : i32
    %c0_i32_2 = arith.constant 0 : i32
    return %c0_i32, %c0_i32_0, %c0_i32_1 : i32, i32, i32
  }
  func.func @transform_6(%arg0: i32) -> (i32, i32, i32) {
    %c0_i32 = arith.constant 0 : i32
    %c0_i32_0 = arith.constant 0 : i32
    %c0_i32_1 = arith.constant 0 : i32
    %c0_i32_2 = arith.constant 0 : i32
    return %c0_i32, %c0_i32_0, %c0_i32_1 : i32, i32, i32
  }
  func.func @transform_7(%arg0: i32) -> (i32, i32, i32) {
    %c0_i32 = arith.constant 0 : i32
    %c0_i32_0 = arith.constant 0 : i32
    %c0_i32_1 = arith.constant 0 : i32
    %c0_i32_2 = arith.constant 0 : i32
    return %c0_i32, %c0_i32_0, %c0_i32_1 : i32, i32, i32
  }
  func.func @transform_8(%arg0: i32) -> (i32, i32, i32) {
    %c0_i32 = arith.constant 0 : i32
    %c0_i32_0 = arith.constant 0 : i32
    %c0_i32_1 = arith.constant 0 : i32
    %c0_i32_2 = arith.constant 0 : i32
    return %c0_i32, %c0_i32_0, %c0_i32_1 : i32, i32, i32
  }
  func.func @transform_9(%arg0: i32) -> (i32, i32, i32) {
    %c0_i32 = arith.constant 0 : i32
    %c0_i32_0 = arith.constant 0 : i32
    %c0_i32_1 = arith.constant 0 : i32
    %c0_i32_2 = arith.constant 0 : i32
    return %c0_i32, %c0_i32_0, %c0_i32_1 : i32, i32, i32
  }
  func.func @transform_10(%arg0: i32) -> (i32, i32) {
    %c0_i32 = arith.constant 0 : i32
    %c0_i32_0 = arith.constant 0 : i32
    %c0_i32_1 = arith.constant 0 : i32
    return %c0_i32, %c0_i32_0 : i32, i32
  }
  func.func @transform_11(%arg0: i32) -> (i32, i32) {
    %c0_i32 = arith.constant 0 : i32
    %c0_i32_0 = arith.constant 0 : i32
    %c0_i32_1 = arith.constant 0 : i32
    return %c0_i32, %c0_i32_0 : i32, i32
  }
  func.func @transform_12(%arg0: i32) -> (i32, i32) {
    %c0_i32 = arith.constant 0 : i32
    %c0_i32_0 = arith.constant 0 : i32
    %c0_i32_1 = arith.constant 0 : i32
    return %c0_i32, %c0_i32_0 : i32, i32
  }
  func.func @transform_13(%arg0: i32) -> (i32, i32) {
    %c0_i32 = arith.constant 0 : i32
    %c0_i32_0 = arith.constant 0 : i32
    %c0_i32_1 = arith.constant 0 : i32
    return %c0_i32, %c0_i32_0 : i32, i32
  }
  func.func @transform_14(%arg0: i32) -> (i32, i32) {
    %c0_i32 = arith.constant 0 : i32
    %c0_i32_0 = arith.constant 0 : i32
    %c0_i32_1 = arith.constant 0 : i32
    return %c0_i32, %c0_i32_0 : i32, i32
  }
  func.func @transform_15(%arg0: i32) -> (i32, i32, i32) {
    %c0_i32 = arith.constant 0 : i32
    %c0_i32_0 = arith.constant 0 : i32
    %c0_i32_1 = arith.constant 0 : i32
    return %arg0, %c0_i32, %c0_i32_0 : i32, i32, i32
  }
}

</mosaic_0001>

<bundles_post_ra>
// kernel: lenet_forward.1
= control target key start
LH: loop header
LB: loop body
LE: loop exit
PB: predicated region body
PF: predicated region fallthrough
CT: control target
= control target key end

     0   :  { %s2913_s0 = inlined_call_operand.vmem [shape: f32[2,28,28], index: 0, kind: input, shape index: {}]   ;;  %s2914_s1 = inlined_call_operand.hbm [shape: f32[5,28,144], index: 1, kind: input, shape index: {}]   ;;  %s2915_s2 = inlined_call_operand.vmem [shape: f32[1,144], index: 2, kind: input, shape index: {}]   ;;  %s2916_s3 = inlined_call_operand.vmem [shape: f32[5,72,128], index: 3, kind: input, shape index: {}]   ;;  %s2917_s4 = inlined_call_operand.vmem [shape: f32[1,128], index: 4, kind: input, shape index: {}]   ;;  %s2918_s5 = inlined_call_operand.vmem [shape: f32[2,12,24], index: 5, kind: input, shape index: {}]   ;;  %s2919_s6 = inlined_call_operand.hbm [shape: f32[2,144,72], index: 6, kind: input, shape index: {}]   ;;  %s2920_s7 = inlined_call_operand.vmem [shape: f32[2,4,8], index: 7, kind: input, shape index: {}]   ;;  %s2921_s8 = inlined_call_operand.vmem [shape: f32[2,128,64], index: 8, kind: input, shape index: {}]   ;;  %s2922_s9 = inlined_call_operand.hbm [shape: f32[4,64,120], index: 9, kind: input, shape index: {}]   ;;  %s2923_s10 = inlined_call_operand.vmem [shape: f32[1,120], index: 10, kind: input, shape index: {}]   ;;  %s2924_s11 = inlined_call_operand.vmem [shape: f32[120,84], index: 11, kind: input, shape index: {}]   ;;  %s2925_s12 = inlined_call_operand.vmem [shape: f32[1,84], index: 12, kind: input, shape index: {}]   ;;  %s2926_s13 = inlined_call_operand.vmem [shape: f32[84,10], index: 13, kind: input, shape index: {}]   ;;  %s2927_s14 = inlined_call_operand.vmem [shape: f32[1,10], index: 14, kind: input, shape index: {}]   ;;  %s2928_s15 = inlined_call_operand.hbm [shape: f32[2,1,10], index: 15, kind: output, shape index: {}]  }
   0x1   :  { %2937 = sst [smem:[#allocation19_spill]] %s2914_s1 }
   0x2   :  { %2938 = sst [smem:[#allocation20_spill]] %s2919_s6 }
   0x3   :  { %2939 = sst [smem:[#allocation21_spill]] %s2927_s14 }
   0x4   :  { %20 = vsyncpa [#allocation3], 0 }
   0x5   :  { %21 = vsyncpa [#allocation6], 0 }
   0x6   :  { %22 = vsyncpa [#allocation4], 0 }
   0x7   :  { %24 = vsyncpa [#allocation4 + $0x1], 0  ;;  %s2325_s18 = smov 0   ;;  %s2327_s19 = smov 0  }
   0x8   :  { %s2329_s20 = smov 0   ;;  %s2331_s21 = smov 0  }
   0x9 LB: > { %2940 = sst [smem:[#allocation12_spill]] %s2224_s18  ;;  %s2346_s22 = sadd.s32 4294967295, %s2236_s21   ;;  %s2236_s21 = sphi %s2331_s21, %s2958_s21   ;;  %s2232_s20 = sphi %s2329_s20, %s2960_s20   ;;  %s2228_s19 = sphi %s2327_s19, %s2962_s19   ;;  %s2224_s18 = sphi %s2325_s18, %s2961_s18  }
   0xa   : > { %2941 = sst [smem:[#allocation13_spill]] %s2232_s20  ;;  %s1858_s23 = sadd.s32 4294967294, %s2236_s21  }
   0xb   : > { %2942 = sst [smem:[#allocation14_spill]] %s2236_s21  ;;  %s2350_s24 = sadd.s32 1, %s2236_s21  }
   0xc   : > { %2943 = sst [smem:[#allocation15_spill]] %s2350_s24  ;;  %s357_s25 = sadd.s32 1, %s2232_s20 }
   0xd   : > { %s354_s26 = ssub.s32 %s2236_s21, %s2350_s24  ;;  %p367_p0 = scmp.ne.s32.totalorder %s2232_s20, %s2228_s19 }
   0xe   : > { %p355_p1 = scmp.eq.s32.totalorder %s354_s26, 0  ;;  %p368_p2 = scmp.eq.s32.totalorder %s2346_s22, 1 }
   0xf   : > { %p373_p3 = scmp.ne.s32.totalorder %s2228_s19, %s2224_s18  ;;  %p374_p4 = scmp.eq.s32.totalorder %s1858_s23, 1 }
  0x10   : > { %s2361_s27 = scalar_select %p355_p1, %s2232_s20, %s357_s25  }
  0x11   : > { %p2363_p5 = por %p368_p2, %p367_p0  ;;  %p2367_p6 = por %p374_p4, %p373_p3 }
  0x12   : > { %2944 = sst [smem:[#allocation16_spill]] %s2361_s27  ;;  %p1859_p7 = scmp.ge.s32.totalorder %s2236_s21, 1 }
  0x13   : > { %s2945_s28 = scalar_select %p2363_p5, 1, 0 }
  0x14   : > { %s2947_s29 = scalar_select %p2367_p6, 1, 0 }
  0x15   : > { %2946 = sst [smem:[#allocation17_spill]] %s2945_s28  ;;  %p381_p8 = scmp.lt.s32.totalorder %s2236_s21, 3 }
  0x16   : > { %2948 = sst [smem:[#allocation18_spill]] %s2947_s29  ;;  %p2029_p9 = scmp.eq.s32.totalorder %s2346_s22, 0 }
  0x17   : > { %p2374_p10 = pnand %p1859_p7, %p381_p8  ;;  %s2950_s6 = sld [smem:[#allocation20_spill]] }
  0x18   : > { %s2238_s25 = smov [#allocation5]   ;;  %s2952_s1 = sld [smem:[#allocation19_spill]] }
  0x19   : > { %p2015_p11 = pneg %p2374_p10  ;;  %s420_s26 = sshll.u32 %s2238_s25, 4  ;;  %s421_s26 = int_to_ptr.vmem [resolvable:$true] %s420_s26 }
  0x1a   : > { %s2239_s16 = smov 128   ;;  %s2240_s17 = smov 8  }
  0x1b   : > { %p2385_p12 = pnand %p2029_p9, %p2015_p11  ;;  %s2242_s18 = smov 256  }
  0x1c   : > { %s2243_s21 = smov 16   ;;  %s438_s20 = sshll.u32 %s2922_s9, 4  ;;  %s439_s20 = int_to_ptr.hbm [resolvable:$true] %s438_s20 }
  0x1d   : > { %s418_s23 = sshll.u32 %s2950_s6, 4  ;;  %s2241_s6 = smov [#allocation2]   ;;  %s419_s23 = int_to_ptr.hbm [resolvable:$true] %s418_s23 }
  0x1e   : > { %s392_s29 = sshll.u32 %s2952_s1, 4  ;;  %s394_s25 = sshll.u32 %s2241_s6, 4  ;;  %s393_s29 = int_to_ptr.hbm [resolvable:$true] %s392_s29  ;;  %s395_s25 = int_to_ptr.vmem [resolvable:$true] %s394_s25 }
  0x1f   : > { %2021 = dma.hbm_to_vmem [thread:$0]  (!%p2385_p12), %s419_s23, 4608, %s421_s26, [#allocation6], %s2239_s16, %s2239_s16, %s2240_s17  }
  0x20   : > { %2018 = dma.hbm_to_vmem [thread:$0]  (!%p2385_p12), %s393_s29, 5120, %s395_s25, [#allocation3], %s2242_s18, %s2242_s18, %s2243_s21  }
  0x21   : > { %s2244_s24 = smov [#allocation7]   ;;  %479 = sbr.rel (%p2374_p10) target bundleno = 1382 (0x566), region = 80 }
  0x22   : > { %s440_s1 = sshll.u32 %s2244_s24, 4  ;;  %s441_s1 = int_to_ptr.vmem [resolvable:$true] %s440_s1 }
  0x23   : > { %2024 = dma.hbm_to_vmem [thread:$0]  (!%p2385_p12), %s439_s20, 4096, %s441_s1, [#allocation6], %s2239_s16, %s2239_s16, %s2240_s17  }
  0x26   : > { %2211 = dma.done.wait (%p2029_p9), [#allocation3], 5120  }
  0x27   : > { %2213 = vsyncadd (%p2029_p9), [#allocation3], 4294962176 }
  0x28   : > { %2215 = dma.done.wait (%p2029_p9), [#allocation6], 8704  }
  0x29   : > { %2217 = vsyncadd (%p2029_p9), [#allocation6], 4294958592  ;;  %p537_p13 = scmp.lt.s32.totalorder %s2346_s22, 1  ;;  %vm582_vm0 = vcmask 1043456   ;;  %v561_v0 = vld [vmem:[#allocation2 + $0x70] sm:$0xf]  ;;  %s1768_s26 = scalar_lea.hbm %s2928_s15, %s2346_s22 }
  0x2a   : > { %v552_v1 = vld [vmem:[#allocation2 + $0x30] sm:$0xf]  ;;  %v559_v2 = vld [vmem:[#allocation2 + $0x60] sm:$0xff]  ;;  %1870 = vmatpush.msk.msra.mxu0 %vm582_vm0, %v561_v0  ;;  %1994 = vmatpush.msk.msra.mxu1 %vm582_vm0, %v561_v0  ;;  %vm567_vm1 = vcmask 1046528   ;;  %v553_v13 = vld [vmem:[#allocation2 + $0x38] sm:$0xf] }
  0x2b   : > { %s538_s6 = scalar_select %p537_p13, %s2346_s22, 1  ;;  %v550_v3 = vld [vmem:[#allocation2 + $0x20] sm:$0xff]  ;;  %1878 = vmatpush.msk.msra.mxu2 %vm582_vm0, %v552_v1  ;;  %v557_v4 = vld [vmem:[#allocation2 + $0x50] sm:$0xff]  ;;  %vm575_vm2 = vcmask 228352   ;;  %1882 = vmatpush.msk.msra.mxu3 %vm582_vm0, %v553_v13  ;;  %v551_v18 = vld [vmem:[#allocation2 + $0x28] sm:$0xff]  ;;  %vm714_vm3 = vcmask 1045504  }
  0x2c   : > { %602 = vmatpush.msra.mxu0 %v559_v2  ;;  %1995 = vmatpush.msra.mxu1 %v559_v2  ;;  %v548_v6 = vld [vmem:[#allocation2 + $0x10] sm:$0xff]  ;;  %v555_v10 = vld [vmem:[#allocation2 + $0x40] sm:$0xff]  ;;  %v562_v20 = vld [vmem:[#allocation2 + $0x78] sm:$0xf]  ;;  %vm801_vm4 = vcmask 1044480   ;;  %vm985_vm5 = vcmask 195584  }
  0x2d   : > { %s1993_s1 = sshll.u32 %s538_s6, 5  ;;  %666 = vmatpush.msra.mxu2 %v550_v3  ;;  %v546_v14 = vld [vmem:[#allocation2] sm:$0xff]  ;;  %v712_v17 = vld [vmem:[#allocation2 + $0xb0] sm:$0xf]  ;;  %v549_v23 = vld [vmem:[#allocation2 + $0x18] sm:$0xff]  ;;  %692 = vmatpush.msra.mxu3 %v551_v18  ;;  %vm1115_vm6 = vcmask 130048  }
  0x2e   : > { %s2416_s21 = scalar_lea.vmem %s2913_s0, %s1993_s1  ;;  %603 = vmatpush.msra.mxu0 %v557_v4  ;;  %1996 = vmatpush.msra.mxu1 %v557_v4  ;;  %v799_v21 = vld [vmem:[#allocation2 + $0xf0] sm:$0xf]  ;;  %v710_v22 = vld [vmem:[#allocation2 + $0xa0] sm:$0xff]  ;;  %v560_v25 = vld [vmem:[#allocation2 + $0x68] sm:$0xff]  ;;  %vm1259_vm7 = vcmask 588800   ;;  %vm1419_vm8 = vcmask 64512  }
  0x2f   : > { %v2422_v5 = vld [vmem:[%s2416_s21] sm:$0xff]  ;;  %v2425_v7 = vld [vmem:[%s2416_s21 + $0x8] sm:$0xff]  ;;  %v2429_v9 = vld [vmem:[%s2416_s21 + $0x10] sm:$0xff]  ;;  %667 = vmatpush.msra.mxu2 %v548_v6  ;;  %693 = vmatpush.msra.mxu3 %v549_v23  ;;  %vm1552_vm9 = vcmask 523264   ;;  %vm1693_vm10 = vcmask 982016   ;;  %vm1730_vm11 = vcmask 687104  }
  0x30   : > { %v568_v8 = vrot.slane %v2422_v5, 1  ;;  %v569_v11 = vrot.slane %v2425_v7, 1  ;;  %v571_v12 = vrot.slane %v2429_v9, 1  ;;  %604 = vmatpush.msra.mxu0 %v555_v10  ;;  %1997 = vmatpush.msra.mxu1 %v555_v10  ;;  %v2441_v19 = vld [vmem:[%s2416_s21 + $0x18] sm:$0xf]  ;;  %v797_v26 = vld [vmem:[#allocation2 + $0xe0] sm:$0xff] }
  0x31   : > { %668 = vmatpush.msra.mxu2 %v546_v14  ;;  %v573_v24 = vrot.slane %v2441_v19, 1  ;;  %v708_v27 = vld [vmem:[#allocation2 + $0x90] sm:$0xff]  ;;  %v715_v28 = vrot.slane %v2422_v5, 2  ;;  %v716_v29 = vrot.slane %v2425_v7, 2  ;;  %v547_v30 = vld [vmem:[#allocation2 + $0x8] sm:$0xff]  ;;  %v558_v31 = vld [vmem:[#allocation2 + $0x58] sm:$0xff] }
  0x32   : > { %v2434_v15 = vsel %vm567_vm1, %v568_v8, %v569_v11  ;;  %v2437_v16 = vsel %vm567_vm1, %v569_v11, %v571_v12  ;;  %1879 = vmatmul.msk.f32.vlgmr.msra.gmra.mxu2 %vm575_vm2, %v2422_v5  ;;  %1886 = vmatpush.msk.msrb.mxu0 %vm582_vm0, %v712_v17  ;;  %v706_v32 = vld [vmem:[#allocation2 + $0x80] sm:$0xff]  ;;  %v795_v33 = vld [vmem:[#allocation2 + $0xd0] sm:$0xff]  ;;  %v556_v36 = vld [vmem:[#allocation2 + $0x48] sm:$0xff]  ;;  %v718_v42 = vrot.slane %v2429_v9, 2  ;;  %v802_v52 = vrot.slane %v2422_v5, 3  ;;  %s535_s29 = sand.u32 1, %s2228_s19  }
  0x33   : > { %1871 = vmatmul.msk.f32.vlgmr.msra.gmra.mxu0 %vm575_vm2, %v2434_v15  ;;  %1872 = vmatmul.msk.f32.vlgmr.msra.gmra.mxu1 %vm575_vm2, %v2437_v16  ;;  %v2456_v34 = vsel %vm567_vm1, %v571_v12, %v573_v24  ;;  %v2459_v35 = vsel %vm714_vm3, %v715_v28, %v716_v29  ;;  %v793_v37 = vld [vmem:[#allocation2 + $0xc0] sm:$0xff]  ;;  %v886_v38 = vld [vmem:[#allocation2 + $0x130] sm:$0xf]  ;;  %v800_v39 = vld [vmem:[#allocation2 + $0xf8] sm:$0xf]  ;;  %v803_v53 = vrot.slane %v2425_v7, 3 }
  0x34   : > { %1874 = vmatpush.msk.msrb.mxu1 %vm582_vm0, %v562_v20  ;;  %1894 = vmatpush.msk.msrb.mxu2 %vm582_vm0, %v799_v21  ;;  %v713_v40 = vld [vmem:[#allocation2 + $0xb8] sm:$0xf]  ;;  %v884_v41 = vld [vmem:[#allocation2 + $0x120] sm:$0xff]  ;;  %v798_v43 = vld [vmem:[#allocation2 + $0xe8] sm:$0xff]  ;;  %v719_v48 = vsel %vm714_vm3, %v716_v29, %v718_v42  ;;  %v720_v54 = vrot.slane %v2441_v19, 2  ;;  %v805_v59 = vrot.slane %v2429_v9, 3 }
  0x35   : > { %747 = vmatpush.msrb.mxu0 %v710_v22  ;;  %694 = vmatpush.msra.mxu3 %v547_v30  ;;  %v711_v44 = vld [vmem:[#allocation2 + $0xa8] sm:$0xff]  ;;  %v882_v45 = vld [vmem:[#allocation2 + $0x110] sm:$0xff]  ;;  %v796_v46 = vld [vmem:[#allocation2 + $0xd8] sm:$0xff]  ;;  %v804_v55 = vsel %vm801_vm4, %v802_v52, %v803_v53  ;;  %v888_v60 = vrot.slane %v2422_v5, 4  ;;  %v889_v61 = vrot.slane %v2425_v7, 4  ;;  %v807_v2 = vrot.slane %v2441_v19, 3 }
  0x36   : > { %628 = vmatpush.msrb.mxu1 %v560_v25  ;;  %834 = vmatpush.msrb.mxu2 %v797_v26  ;;  %v709_v47 = vld [vmem:[#allocation2 + $0x98] sm:$0xff]  ;;  %v794_v49 = vld [vmem:[#allocation2 + $0xc8] sm:$0xff]  ;;  %v880_v50 = vld [vmem:[#allocation2 + $0x100] sm:$0xff]  ;;  %v721_v56 = vsel %vm714_vm3, %v718_v42, %v720_v54  ;;  %v806_v0 = vsel %vm801_vm4, %v803_v53, %v805_v59  ;;  %v891_v3 = vrot.slane %v2429_v9, 4  ;;  %v893_v6 = vrot.slane %v2441_v19, 4  ;;  %s2953_s25 = sld [smem:[#allocation21_spill]] }
  0x37   : > { %748 = vmatpush.msrb.mxu0 %v708_v27  ;;  %1883 = vmatmul.msk.f32.vlgmr.msra.gmra.mxu3 %vm575_vm2, %v2422_v5  ;;  %v707_v51 = vld [vmem:[#allocation2 + $0x88] sm:$0xff]  ;;  %v887_v57 = vld [vmem:[#allocation2 + $0x138] sm:$0xf]  ;;  %v890_v1 = vsel %vm582_vm0, %v888_v60, %v889_v61  ;;  %v808_v4 = vsel %vm801_vm4, %v805_v59, %v807_v2  ;;  %v983_v53 = vld [vmem:[%s2918_s5] sm:$0xff]  ;;  %s536_s24 = scalar_lea.vmem [#allocation8], %s535_s29  ;;  %s1772_s1 = sshll.u32 %s1768_s26, 4  ;;  %s1773_s1 = int_to_ptr.hbm [resolvable:$true] %s1772_s1 }
  0x38   : > { %629 = vmatpush.msrb.mxu1 %v558_v31  ;;  %835 = vmatpush.msrb.mxu2 %v795_v33  ;;  %v885_v58 = vld [vmem:[#allocation2 + $0x128] sm:$0xff]  ;;  %v883_v62 = vld [vmem:[#allocation2 + $0x118] sm:$0xff]  ;;  %v892_v5 = vsel %vm582_vm0, %v889_v61, %v891_v3  ;;  %v1111_v2 = vld [vmem:[#allocation5 + $0x70] sm:$0xff]  ;;  %s1770_s6 = sshll.u32 %s536_s24, 4  ;;  %vm1757_vm12 = vcmask 73728   ;;  %s1760_s14 = scalar_lea.sflag [#allocation4], %s535_s29  ;;  %s1771_s6 = int_to_ptr.vmem [resolvable:$true] %s1770_s6 }
  0x39   : > { %749 = vmatpush.msrb.mxu0 %v706_v32  ;;  %1898 = vmatpush.msk.msrb.mxu3 %vm582_vm0, %v800_v39  ;;  %v881_v63 = vld [vmem:[#allocation2 + $0x108] sm:$0xff]  ;;  %s2180_s18 = sshra.s32 %s1773_s1, 4  ;;  %s2186_s28 = scalar_lea.hbm %s2928_s15, 2  ;;  %s2181_s18 = int_to_ptr.hbm [resolvable:$true] %s2180_s18 }
  0x3a   : > { %1880 = vmatmul.msk.f32.gmra.mxu2 %vm575_vm2, %v2425_v7  ;;  %630 = vmatpush.msrb.mxu1 %v556_v36  ;;  %v965_v36 = vld [vmem:[%s2915_s2] sm:$0x3]  ;;  %s2182_s21 = scalar_lea.hbm %s2181_s18, 1  ;;  %p2187_p3 = scmp.lt.s32.totalorder %s2181_s18, %s2928_s15 }
  0x3b   : > { %1873 = vmatmul.msk.f32.gmra.mxu1 %vm575_vm2, %v2456_v34  ;;  %1887 = vmatmul.msk.f32.vlgmr.msrb.gmra.mxu0 %vm575_vm2, %v2459_v35  ;;  %p2183_p0 = scmp.ne.s32.totalorder %s2181_s18, %s2182_s21  ;;  %p2188_p4 = scmp.lt.s32.totalorder %s2186_s28, %s2182_s21 }
  0x3c   : > { %836 = vmatpush.msrb.mxu2 %v793_v37  ;;  %1902 = vmatpush.msk.msra.mxu0 %vm582_vm0, %v886_v38 }
  0x3d   : > { %1890 = vmatpush.msk.msra.mxu1 %vm582_vm0, %v713_v40  ;;  %860 = vmatpush.msrb.mxu3 %v798_v43  ;;  %v967_v43 = vperm.slane %v965_v36, 0  ;;  %p2184_p1 = pnand %p2183_p0, %p2363_p5  ;;  %p2189_p7 = por %p2188_p4, %p2187_p3 }
  0x3e   : > { %920 = vmatpush.msra.mxu0 %v884_v41 }
  0x3f   : > { %773 = vmatpush.msra.mxu1 %v711_v44  ;;  %1884 = vmatmul.msk.f32.gmra.mxu3 %vm575_vm2, %v2425_v7  ;;  %v894_v7 = vsel %vm582_vm0, %v891_v3, %v893_v6  ;;  %p2185_p2 = pneg %p2184_p1 }
  0x40   : > { %921 = vmatpush.msra.mxu0 %v882_v45  ;;  %861 = vmatpush.msrb.mxu3 %v796_v46 }
  0x41   : > { %774 = vmatpush.msra.mxu1 %v709_v47  ;;  %p2190_p8 = pnand %p2189_p7, %p2185_p2 }
  0x42   : > { %1881 = vmatmul.msk.f32.gmra.mxu2 %vm575_vm2, %v2429_v9  ;;  %862 = vmatpush.msrb.mxu3 %v794_v49 }
  0x43   : > { %1875 = vmatmul.msk.f32.vlgmr.msrb.gmra.mxu1 %vm575_vm2, %v2434_v15  ;;  %1888 = vmatmul.msk.f32.gmra.mxu0 %vm575_vm2, %v719_v48 }
  0x44   : > { %922 = vmatpush.msra.mxu0 %v880_v50  ;;  %775 = vmatpush.msra.mxu1 %v707_v51 }
  0x46   : > { %1906 = vmatpush.msk.msrb.mxu1 %vm582_vm0, %v887_v57 }
  0x47   : > { %1885 = vmatmul.msk.f32.gmra.mxu3 %vm575_vm2, %v2429_v9 }
  0x48   : > { %946 = vmatpush.msrb.mxu1 %v885_v58 }
  0x4a   : > { %1895 = vmatmul.msk.f32.vlgmr.msrb.gmra.mxu2 %vm575_vm2, %v804_v55  ;;  %947 = vmatpush.msrb.mxu1 %v883_v62 }
  0x4b   : > { %1876 = vmatmul.msk.f32.gmra.mxu1 %vm575_vm2, %v2437_v16  ;;  %1889 = vmatmul.msk.f32.gmra.mxu0 %vm575_vm2, %v721_v56 }
  0x4c   : > { %948 = vmatpush.msrb.mxu1 %v881_v63 }
  0x4f   : > { %1899 = vmatmul.msk.f32.vlgmr.msrb.gmra.mxu3 %vm575_vm2, %v804_v55 }
  0x52   : > { %1896 = vmatmul.msk.f32.gmra.mxu2 %vm575_vm2, %v806_v0 }
  0x53   : > { %1877 = vmatmul.msk.f32.gmra.mxu1 %vm575_vm2, %v2456_v34  ;;  %1903 = vmatmul.msk.f32.vlgmr.msra.gmra.mxu0 %vm575_vm2, %v890_v1 }
  0x57   : > { %1900 = vmatmul.msk.f32.gmra.mxu3 %vm575_vm2, %v806_v0 }
  0x5a   : > { %1897 = vmatmul.msk.f32.gmra.mxu2 %vm575_vm2, %v808_v4 }
  0x5b   : > { %1891 = vmatmul.msk.f32.vlgmr.msra.gmra.mxu1 %vm575_vm2, %v2459_v35  ;;  %1904 = vmatmul.msk.f32.gmra.mxu0 %vm575_vm2, %v892_v5 }
  0x5f   : > { %1901 = vmatmul.msk.f32.gmra.mxu3 %vm575_vm2, %v808_v4 }
  0x63   : > { %1892 = vmatmul.msk.f32.gmra.mxu1 %vm575_vm2, %v719_v48  ;;  %1905 = vmatmul.msk.f32.gmra.mxu0 %vm575_vm2, %v894_v7 }
  0x6b   : > { %1893 = vmatmul.msk.f32.gmra.mxu1 %vm575_vm2, %v721_v56  ;;  %v984_v56 = vld [vmem:[%s2918_s5 + $0x8] sm:$0xf] }
  0x73   : > { %1907 = vmatmul.msk.f32.vlgmr.msrb.gmra.mxu1 %vm575_vm2, %v890_v1  ;;  %v1112_v1 = vld [vmem:[#allocation5 + $0x78] sm:$0xff] }
  0x74   : > { %1122 = vmatpush.msrb.mxu0 %v1112_v1 }
  0x76   : > { %1123 = vmatpush.msrb.mxu0 %v1111_v2 }
  0x7b   : > { %1908 = vmatmul.msk.f32.gmra.mxu1 %vm575_vm2, %v892_v5 }
  0x83   : > { %1909 = vmatmul.msk.f32.gmra.mxu1 %vm575_vm2, %v894_v7 }
  0xb0   : > { %v606_v8 = vpop.f32.mrf.mxu0  ;;  %v609_v9 = vpop.f32.mrf.mxu1 }
  0xb5   : > { %v670_v10 = vpop.f32.mrf.mxu2 }
  0xb6   : > { %v671_v26 = vadd.f32 %v670_v10, %v606_v8 }
  0xb8   : > { %v612_v11 = vpop.f32.mrf.mxu1  ;;  %v751_v12 = vpop.f32.mrf.mxu0 }
  0xb9   : > { %v786_v31 = vadd.f32 %v751_v12, %v671_v26  ;;  %v1180_v26 = vld [vmem:[#allocation5 + $0xe8] sm:$0xff] }
  0xba   : > { %v696_v19 = vpop.f32.mrf.mxu3 }
  0xbd   : > { %v673_v13 = vpop.f32.mrf.mxu2 }
  0xbe   : > { %v674_v23 = vadd.f32 %v673_v13, %v609_v9  ;;  %v968_v9 = vperm.slane %v965_v36, 1  ;;  %v1175_v36 = vld [vmem:[#allocation5 + $0xc0] sm:$0xff] }
  0xc0   : > { %v632_v14 = vpop.f32.mrf.mxu1  ;;  %v754_v15 = vpop.f32.mrf.mxu0 }
  0xc1   : > { %v788_v30 = vadd.f32 %v754_v15, %v674_v23  ;;  %v697_v59 = vadd.f32 %v696_v19, %v632_v14  ;;  %v1183_v19 = vld [vmem:[#allocation5 + $0x100] sm:$0xff] }
  0xc2   : > { %v699_v24 = vpop.f32.mrf.mxu3  ;;  %v1109_v23 = vld [vmem:[#allocation5 + $0x60] sm:$0xff] }
  0xc5   : > { %v676_v16 = vpop.f32.mrf.mxu2 }
  0xc6   : > { %v677_v28 = vadd.f32 %v676_v16, %v612_v11 }
  0xc8   : > { %v635_v17 = vpop.f32.mrf.mxu1  ;;  %v757_v18 = vpop.f32.mrf.mxu0 }
  0xc9   : > { %v790_v33 = vadd.f32 %v757_v18, %v677_v28  ;;  %v700_v57 = vadd.f32 %v699_v24, %v635_v17  ;;  %v1184_v17 = vld [vmem:[#allocation5 + $0x108] sm:$0xff]  ;;  %v1914_v18 = vld [vmem:[%s2918_s5 + $0x10] sm:$0xff]  ;;  %v1179_v28 = vld [vmem:[#allocation5 + $0xe0] sm:$0xff] }
  0xca   : > { %v702_v38 = vpop.f32.mrf.mxu3  ;;  %v1181_v24 = vld [vmem:[#allocation5 + $0xf0] sm:$0xff] }
  0xcd   : > { %v838_v20 = vpop.f32.mrf.mxu2 }
  0xce   : > { %v873_v34 = vadd.f32 %v838_v20, %v786_v31  ;;  %v1915_v20 = vld [vmem:[%s2918_s5 + $0x18] sm:$0xf]  ;;  %v1105_v31 = vld [vmem:[#allocation5 + $0x40] sm:$0xff] }
  0xd0   : > { %v638_v21 = vpop.f32.mrf.mxu1  ;;  %v924_v22 = vpop.f32.mrf.mxu0 }
  0xd1   : > { %v959_v42 = vadd.f32 %v924_v22, %v873_v34  ;;  %v703_v60 = vadd.f32 %v702_v38, %v638_v21  ;;  %v1110_v21 = vld [vmem:[#allocation5 + $0x68] sm:$0xff]  ;;  %v1182_v22 = vld [vmem:[#allocation5 + $0xf8] sm:$0xff] }
  0xd2   : > { %v864_v50 = vpop.f32.mrf.mxu3  ;;  %1124 = vmatpush.msrb.mxu0 %v1110_v21  ;;  %v1176_v34 = vld [vmem:[#allocation5 + $0xc8] sm:$0xff]  ;;  %v1174_v38 = vld [vmem:[#allocation5 + $0xb8] sm:$0xff]  ;;  %v1961_v21 = vld [vmem:[%s2916_s3 + $0x150] sm:$0xff] }
  0xd3   : > { %v971_v47 = vadd.f32 %v967_v43, %v959_v42  ;;  %v1172_v42 = vld [vmem:[#allocation5 + $0xa8] sm:$0xff] }
  0xd4   : > { %1125 = vmatpush.msrb.mxu0 %v1109_v23  ;;  %v1235_v23 = vld [vmem:[%s2916_s3] sm:$0xff] }
  0xd5   : > { %v841_v25 = vpop.f32.mrf.mxu2  ;;  %v977_v52 = vmax.f32 %v971_v47, 0.0  ;;  %v1170_v47 = vld [vmem:[#allocation5 + $0x98] sm:$0xff] }
  0xd6   : > { %v875_v32 = vadd.f32 %v841_v25, %v788_v30  ;;  %v1108_v25 = vld [vmem:[#allocation5 + $0x58] sm:$0xff] }
  0xd7   : > { %1126 = vmatpush.msrb.mxu0 %v1108_v25  ;;  %v1178_v30 = vld [vmem:[#allocation5 + $0xd8] sm:$0xff]  ;;  %v1960_v25 = vld [vmem:[%s2916_s3 + $0x148] sm:$0xff] }
  0xd8   : > { %v777_v27 = vpop.f32.mrf.mxu1  ;;  %v927_v29 = vpop.f32.mrf.mxu0 }
  0xd9   : > { %v961_v39 = vadd.f32 %v927_v29, %v875_v32  ;;  %v787_v62 = vadd.f32 %v777_v27, %v697_v59  ;;  %v1107_v27 = vld [vmem:[#allocation5 + $0x50] sm:$0xff]  ;;  %v1106_v29 = vld [vmem:[#allocation5 + $0x48] sm:$0xff] }
  0xda   : > { %v867_v55 = vpop.f32.mrf.mxu3  ;;  %1127 = vmatpush.msrb.mxu0 %v1107_v27  ;;  %v1177_v32 = vld [vmem:[#allocation5 + $0xd0] sm:$0xff] }
  0xdb   : > { %v973_v45 = vadd.f32 %v967_v43, %v961_v39  ;;  %v874_v4 = vadd.f32 %v864_v50, %v787_v62  ;;  %v1101_v39 = vld [vmem:[#allocation5 + $0x20] sm:$0xff]  ;;  %v1241_v59 = vld [vmem:[%s2916_s3 + $0x30] sm:$0xff] }
  0xdc   : > { %1128 = vmatpush.msrb.mxu0 %v1106_v29  ;;  %v1113_v50 = vld [vmem:[#allocation5 + $0x80] sm:$0xff]  ;;  %v1939_v27 = vld [vmem:[%s2916_s3 + $0xb0] sm:$0xff] }
  0xdd   : > { %v844_v35 = vpop.f32.mrf.mxu2  ;;  %v979_v49 = vmax.f32 %v973_v45, 0.0  ;;  %v1098_v45 = vld [vmem:[#allocation5 + $0x8] sm:$0xff]  ;;  %v1959_v29 = vld [vmem:[%s2916_s3 + $0x140] sm:$0xff] }
  0xde   : > { %v877_v37 = vadd.f32 %v844_v35, %v790_v33  ;;  %v1104_v33 = vld [vmem:[#allocation5 + $0x38] sm:$0xff]  ;;  %1129 = vmatpush.msrb.mxu0 %v1105_v31  ;;  %v1103_v35 = vld [vmem:[#allocation5 + $0x30] sm:$0xff] }
  0xdf   : > { %v1952_v31 = vld [vmem:[%s2916_s3 + $0x110] sm:$0xff] }
  0xe0   : > { %v780_v40 = vpop.f32.mrf.mxu1  ;;  %v930_v41 = vpop.f32.mrf.mxu0  ;;  %1130 = vmatpush.msrb.mxu0 %v1104_v33  ;;  %v1937_v33 = vld [vmem:[%s2916_s3 + $0xa0] sm:$0xff] }
  0xe1   : > { %v963_v44 = vadd.f32 %v930_v41, %v877_v37  ;;  %v789_v61 = vadd.f32 %v780_v40, %v700_v57  ;;  %v1102_v37 = vld [vmem:[#allocation5 + $0x28] sm:$0xff]  ;;  %v1173_v40 = vld [vmem:[#allocation5 + $0xb0] sm:$0xff]  ;;  %v1100_v41 = vld [vmem:[#allocation5 + $0x18] sm:$0xff] }
  0xe2   : > { %v870_v0 = vpop.f32.mrf.mxu3  ;;  %1131 = vmatpush.msrb.mxu0 %v1103_v35  ;;  %v1931_v57 = vld [vmem:[%s2916_s3 + $0x80] sm:$0xff]  ;;  %v1957_v35 = vld [vmem:[%s2916_s3 + $0x130] sm:$0xff] }
  0xe3   : > { %v975_v46 = vadd.f32 %v967_v43, %v963_v44  ;;  %v876_v3 = vadd.f32 %v867_v55, %v789_v61  ;;  %v1099_v43 = vld [vmem:[#allocation5 + $0x10] sm:$0xff]  ;;  %v1171_v44 = vld [vmem:[#allocation5 + $0xa0] sm:$0xff]  ;;  %v1932_v55 = vld [vmem:[%s2916_s3 + $0x88] sm:$0xff] }
  0xe4   : > { %1132 = vmatpush.msrb.mxu0 %v1102_v37  ;;  %v1950_v37 = vld [vmem:[%s2916_s3 + $0x100] sm:$0xff] }
  0xe5   : > { %v981_v48 = vmax.f32 %v975_v46, 0.0  ;;  %v1114_v46 = vld [vmem:[#allocation5 + $0x88] sm:$0xff] }
  0xe6   : > { %1133 = vmatpush.msrb.mxu0 %v1101_v39  ;;  %1159 = vmatpush.msra.mxu1 %v1114_v46  ;;  %v1935_v39 = vld [vmem:[%s2916_s3 + $0x90] sm:$0xff] }
  0xe7   : > { %1005 = vmatpush.msra.mxu2 %v981_v48 }
  0xe8   : > { %v783_v51 = vpop.f32.mrf.mxu1  ;;  %1134 = vmatpush.msrb.mxu0 %v1100_v41  ;;  %1160 = vmatpush.msra.mxu1 %v1113_v50  ;;  %v1955_v41 = vld [vmem:[%s2916_s3 + $0x120] sm:$0xff] }
  0xe9   : > { %1006 = vmatpush.msra.mxu2 %v979_v49  ;;  %v791_v63 = vadd.f32 %v783_v51, %v703_v60  ;;  %v1169_v51 = vld [vmem:[#allocation5 + $0x90] sm:$0xff] }
  0xea   : > { %1135 = vmatpush.msrb.mxu0 %v1099_v43  ;;  %1269 = vmatpush.msrb.mxu1 %v1932_v55  ;;  %v1947_v43 = vld [vmem:[%s2916_s3 + $0xe8] sm:$0xff] }
  0xeb   : > { %1007 = vmatpush.msra.mxu2 %v977_v52  ;;  %v878_v5 = vadd.f32 %v870_v0, %v791_v63 }
  0xec   : > { %1910 = vmatmul.msk.f32.vlgmr.msra.gmra.mxu2 %vm985_vm5, %v983_v53  ;;  %1136 = vmatpush.msrb.mxu0 %v1098_v45  ;;  %v1945_v45 = vld [vmem:[%s2916_s3 + $0xd8] sm:$0xff] }
  0xed   : > { %1270 = vmatpush.msrb.mxu1 %v1931_v57 }
  0xf0   : > { %v950_v54 = vpop.f32.mrf.mxu1 }
  0xf1   : > { %v960_v8 = vadd.f32 %v950_v54, %v874_v4  ;;  %v1243_v54 = vld [vmem:[%s2916_s3 + $0x40] sm:$0xff] }
  0xf3   : > { %v972_v13 = vadd.f32 %v968_v9, %v960_v8  ;;  %v1929_v8 = vld [vmem:[%s2916_s3 + $0x70] sm:$0xff] }
  0xf4   : > { %1911 = vmatmul.msk.f32.gmra.mxu2 %vm985_vm5, %v984_v56 }
  0xf5   : > { %v978_v16 = vmax.f32 %v972_v13, 0.0  ;;  %v1963_v13 = vld [vmem:[%s2916_s3 + $0x160] sm:$0xff] }
  0xf8   : > { %v953_v58 = vpop.f32.mrf.mxu1 }
  0xf9   : > { %v962_v6 = vadd.f32 %v953_v58, %v876_v3 }
  0xfb   : > { %v974_v11 = vadd.f32 %v968_v9, %v962_v6  ;;  %v1930_v6 = vld [vmem:[%s2916_s3 + $0x78] sm:$0xff] }
  0xfc   : > { %1271 = vmatpush.msrb.mxu1 %v1930_v6 }
  0xfd   : > { %v980_v15 = vmax.f32 %v974_v11, 0.0  ;;  %v1238_v11 = vld [vmem:[%s2916_s3 + $0x18] sm:$0xff] }
  0xfe   : > { %1272 = vmatpush.msrb.mxu1 %v1929_v8 }
 0x100   : > { %v956_v7 = vpop.f32.mrf.mxu1 }
 0x101   : > { %v964_v10 = vadd.f32 %v956_v7, %v878_v5  ;;  %v1240_v7 = vld [vmem:[%s2916_s3 + $0x28] sm:$0xff] }
 0x103   : > { %v976_v12 = vadd.f32 %v968_v9, %v964_v10  ;;  %v1239_v9 = vld [vmem:[%s2916_s3 + $0x20] sm:$0xff]  ;;  %v1928_v10 = vld [vmem:[%s2916_s3 + $0x68] sm:$0xff] }
 0x104   : > { %1273 = vmatpush.msrb.mxu1 %v1928_v10 }
 0x105   : > { %v982_v14 = vmax.f32 %v976_v12, 0.0  ;;  %v1943_v12 = vld [vmem:[%s2916_s3 + $0xd0] sm:$0xff] }
 0x107   : > { %1028 = vmatpush.msrb.mxu2 %v982_v14  ;;  %1998 = vmatpush.msra.mxu3 %v982_v14 }
 0x109   : > { %1029 = vmatpush.msrb.mxu2 %v980_v15  ;;  %1999 = vmatpush.msra.mxu3 %v980_v15 }
 0x10b   : > { %1030 = vmatpush.msrb.mxu2 %v978_v16  ;;  %2000 = vmatpush.msra.mxu3 %v978_v16 }
 0x10c   : > { %1912 = vmatmul.msk.f32.vlgmr.msrb.gmra.mxu2 %vm985_vm5, %v983_v53  ;;  %1913 = vmatmul.msk.f32.vlgmr.msra.gmra.mxu3 %vm985_vm5, %v984_v56  ;;  %v1242_v56 = vld [vmem:[%s2916_s3 + $0x38] sm:$0xff] }
 0x10d   : > { %1060 = vmatpush.msra.mxu2 %v981_v48  ;;  %1083 = vmatpush.msrb.mxu3 %v982_v14  ;;  %v1186_v48 = vld [vmem:[#allocation5 + $0x118] sm:$0xff]  ;;  %v1927_v14 = vld [vmem:[%s2916_s3 + $0x60] sm:$0xff] }
 0x10e   : > { %1274 = vmatpush.msrb.mxu1 %v1927_v14 }
 0x10f   : > { %1061 = vmatpush.msra.mxu2 %v979_v49  ;;  %1084 = vmatpush.msrb.mxu3 %v980_v15  ;;  %v1097_v49 = vld [vmem:[#allocation5] sm:$0xff]  ;;  %v1237_v15 = vld [vmem:[%s2916_s3 + $0x10] sm:$0xff] }
 0x110   : > { %1137 = vmatpush.msrb.mxu0 %v1097_v49 }
 0x111   : > { %1062 = vmatpush.msra.mxu2 %v977_v52  ;;  %1085 = vmatpush.msrb.mxu3 %v978_v16  ;;  %v1185_v52 = vld [vmem:[#allocation5 + $0x110] sm:$0xff]  ;;  %v1942_v16 = vld [vmem:[%s2916_s3 + $0xc8] sm:$0xff] }
 0x112   : > { %1291 = vmatpush.msra.mxu0 %v1243_v54 }
 0x113   : > { %1187 = vmatpush.msrb.mxu2 %v1184_v17  ;;  %1224 = vmatpush.msra.mxu3 %v1186_v48  ;;  %v1962_v17 = vld [vmem:[%s2916_s3 + $0x158] sm:$0xff] }
 0x114   : > { %1916 = vmatmul.msk.f32.vlgmr.msra.gmra.mxu2 %vm985_vm5, %v1914_v18  ;;  %1918 = vmatmul.msk.f32.vlgmr.msrb.gmra.mxu3 %vm985_vm5, %v1914_v18  ;;  %v1926_v18 = vld [vmem:[%s2916_s3 + $0x58] sm:$0xff] }
 0x115   : > { %1188 = vmatpush.msrb.mxu2 %v1183_v19  ;;  %1225 = vmatpush.msra.mxu3 %v1185_v52  ;;  %v1236_v19 = vld [vmem:[%s2916_s3 + $0x8] sm:$0xff] }
 0x116   : > { %1292 = vmatpush.msra.mxu0 %v1242_v56  ;;  %1275 = vmatpush.msrb.mxu1 %v1926_v18 }
 0x117   : > { %1189 = vmatpush.msrb.mxu2 %v1182_v22  ;;  %1326 = vmatpush.msrb.mxu3 %v1943_v12  ;;  %v1925_v22 = vld [vmem:[%s2916_s3 + $0x50] sm:$0xff] }
 0x118   : > { %1293 = vmatpush.msra.mxu0 %v1241_v59  ;;  %1276 = vmatpush.msrb.mxu1 %v1925_v22  ;;  %v1983_v22 = vld [vmem:[%s2921_s8 + $0xf8] sm:$0xff] }
 0x119   : > { %1190 = vmatpush.msrb.mxu2 %v1181_v24  ;;  %1327 = vmatpush.msrb.mxu3 %v1942_v16  ;;  %v1940_v24 = vld [vmem:[%s2916_s3 + $0xb8] sm:$0xff] }
 0x11a   : > { %1294 = vmatpush.msra.mxu0 %v1240_v7 }
 0x11b   : > { %1191 = vmatpush.msrb.mxu2 %v1180_v26  ;;  %v1924_v26 = vld [vmem:[%s2916_s3 + $0x48] sm:$0xff] }
 0x11c   : > { %1917 = vmatmul.msk.f32.gmra.mxu2 %vm985_vm5, %v1915_v20  ;;  %1919 = vmatmul.msk.f32.gmra.mxu3 %vm985_vm5, %v1915_v20  ;;  %v1941_v20 = vld [vmem:[%s2916_s3 + $0xc0] sm:$0xff] }
 0x11d   : > { %1192 = vmatpush.msrb.mxu2 %v1179_v28  ;;  %1295 = vmatpush.msra.mxu0 %v1239_v9  ;;  %v1953_v28 = vld [vmem:[%s2916_s3 + $0x118] sm:$0xff] }
 0x11e   : > { %1328 = vmatpush.msrb.mxu3 %v1941_v20  ;;  %1277 = vmatpush.msrb.mxu1 %v1924_v26  ;;  %v1966_v20 = vld [vmem:[%s2920_s7 + $0x4] sm:$0xf]  ;;  %v1981_v26 = vld [vmem:[%s2921_s8 + $0xe8] sm:$0xff] }
 0x11f   : > { %1193 = vmatpush.msrb.mxu2 %v1178_v30  ;;  %1296 = vmatpush.msra.mxu0 %v1238_v11  ;;  %v1938_v30 = vld [vmem:[%s2916_s3 + $0xa8] sm:$0xff] }
 0x120   : > { %1329 = vmatpush.msrb.mxu3 %v1940_v24  ;;  %v1982_v24 = vld [vmem:[%s2921_s8 + $0xf0] sm:$0xff] }
 0x121   : > { %1194 = vmatpush.msrb.mxu2 %v1177_v32  ;;  %1297 = vmatpush.msra.mxu0 %v1237_v15  ;;  %v1958_v32 = vld [vmem:[%s2916_s3 + $0x138] sm:$0xff]  ;;  %v2075_v15 = vld [vmem:[%s2917_s4] ss:$0 sm:$0xff] }
 0x122   : > { %1330 = vmatpush.msrb.mxu3 %v1939_v27  ;;  %v1482_v27 = vld [vmem:[%s2921_s8 + $0x68] sm:$0xff] }
 0x123   : > { %1195 = vmatpush.msrb.mxu2 %v1176_v34  ;;  %1298 = vmatpush.msra.mxu0 %v1236_v19  ;;  %v1951_v34 = vld [vmem:[%s2916_s3 + $0x108] sm:$0xff] }
 0x124   : > { %1331 = vmatpush.msrb.mxu3 %v1938_v30  ;;  %v1979_v30 = vld [vmem:[%s2921_s8 + $0xd8] sm:$0xff] }
 0x125   : > { %1196 = vmatpush.msrb.mxu2 %v1175_v36  ;;  %1299 = vmatpush.msra.mxu0 %v1235_v23  ;;  %v1936_v36 = vld [vmem:[%s2916_s3 + $0x98] sm:$0xff] }
 0x126   : > { %1332 = vmatpush.msrb.mxu3 %v1937_v33  ;;  %v1484_v23 = vld [vmem:[%s2921_s8 + $0x78] sm:$0xff]  ;;  %v1479_v33 = vld [vmem:[%s2921_s8 + $0x50] sm:$0xff] }
 0x127   : > { %1197 = vmatpush.msrb.mxu2 %v1174_v38  ;;  %v1956_v38 = vld [vmem:[%s2916_s3 + $0x128] sm:$0xff] }
 0x128   : > { %1333 = vmatpush.msrb.mxu3 %v1936_v36  ;;  %v1976_v36 = vld [vmem:[%s2921_s8 + $0xc0] sm:$0xff] }
 0x129   : > { %1198 = vmatpush.msrb.mxu2 %v1173_v40  ;;  %v1949_v40 = vld [vmem:[%s2916_s3 + $0xf8] sm:$0xff] }
 0x12a   : > { %1334 = vmatpush.msrb.mxu3 %v1935_v39  ;;  %v1476_v39 = vld [vmem:[%s2921_s8 + $0x38] sm:$0xff] }
 0x12b   : > { %1199 = vmatpush.msrb.mxu2 %v1172_v42  ;;  %v1948_v42 = vld [vmem:[%s2916_s3 + $0xf0] sm:$0xff] }
 0x12d   : > { %1200 = vmatpush.msrb.mxu2 %v1171_v44  ;;  %v1946_v44 = vld [vmem:[%s2916_s3 + $0xe0] sm:$0xff] }
 0x12f   : > { %1201 = vmatpush.msrb.mxu2 %v1170_v47 }
 0x131   : > { %1202 = vmatpush.msrb.mxu2 %v1169_v51 }
 0x133   : > { %1398 = vmatpush.msra.mxu2 %v1963_v13 }
 0x135   : > { %1399 = vmatpush.msra.mxu2 %v1962_v17 }
 0x137   : > { %1400 = vmatpush.msra.mxu2 %v1961_v21  ;;  %v1418_v21 = vld [vmem:[%s2920_s7] sm:$0xf] }
 0x139   : > { %1401 = vmatpush.msra.mxu2 %v1960_v25  ;;  %v1483_v25 = vld [vmem:[%s2921_s8 + $0x70] sm:$0xff] }
 0x13b   : > { %1402 = vmatpush.msra.mxu2 %v1959_v29  ;;  %v1481_v29 = vld [vmem:[%s2921_s8 + $0x60] sm:$0xff] }
 0x13d   : > { %1403 = vmatpush.msra.mxu2 %v1958_v32  ;;  %v1978_v32 = vld [vmem:[%s2921_s8 + $0xd0] sm:$0xff] }
 0x13f   : > { %1404 = vmatpush.msra.mxu2 %v1957_v35  ;;  %v1478_v35 = vld [vmem:[%s2921_s8 + $0x48] sm:$0xff] }
 0x141   : > { %1405 = vmatpush.msra.mxu2 %v1956_v38  ;;  %v1975_v38 = vld [vmem:[%s2921_s8 + $0xb8] sm:$0xff] }
 0x143   : > { %1406 = vmatpush.msra.mxu2 %v1955_v41  ;;  %v1475_v41 = vld [vmem:[%s2921_s8 + $0x30] sm:$0xff] }
 0x16f   : > { %v1009_v53 = vpop.f32.mrf.mxu2 }
 0x177   : > { %v1012_v58 = vpop.f32.mrf.mxu2 }
 0x18f   : > { %v1032_v60 = vpop.f32.mrf.mxu2  ;;  %v1035_v61 = vpop.f32.mrf.mxu3 }
 0x197   : > { %v1064_v62 = vpop.f32.mrf.mxu2  ;;  %v1087_v63 = vpop.f32.mrf.mxu3 }
 0x198   : > { %v1093_v0 = vmax.f32 %v1009_v53, %v1064_v62  ;;  %v1094_v1 = vmax.f32 %v1032_v60, %v1087_v63 }
 0x19a   : > { %1138 = vmatmul.f32.vlgmr.msrb.gmra.mxu0 %v1093_v0  ;;  %1920 = vmatmul.msk.f32.vlgmr.msra.gmra.mxu1 %vm1115_vm6, %v1094_v1 }
 0x19b   : > { %1203 = vmatmul.f32.vlgmr.msrb.gmra.mxu2 %v1093_v0  ;;  %1922 = vmatmul.msk.f32.vlgmr.msra.gmra.mxu3 %vm1115_vm6, %v1094_v1 }
 0x19c   : > { %1362 = vmatpush.msra.mxu1 %v1953_v28  ;;  %v1980_v28 = vld [vmem:[%s2921_s8 + $0xe0] sm:$0xff] }
 0x19e   : > { %1363 = vmatpush.msra.mxu1 %v1952_v31  ;;  %v1480_v31 = vld [vmem:[%s2921_s8 + $0x58] sm:$0xff] }
 0x19f   : > { %v1067_v2 = vpop.f32.mrf.mxu2  ;;  %v1090_v3 = vpop.f32.mrf.mxu3 }
 0x1a0   : > { %v1095_v4 = vmax.f32 %v1012_v58, %v1067_v2  ;;  %v1096_v5 = vmax.f32 %v1035_v61, %v1090_v3  ;;  %1364 = vmatpush.msra.mxu1 %v1951_v34  ;;  %v1977_v34 = vld [vmem:[%s2921_s8 + $0xc8] sm:$0xff] }
 0x1a2   : > { %1141 = vmatmul.f32.gmra.mxu0 %v1095_v4  ;;  %1921 = vmatmul.msk.f32.gmra.mxu1 %vm1115_vm6, %v1096_v5 }
 0x1a3   : > { %1206 = vmatmul.f32.gmra.mxu2 %v1095_v4  ;;  %1923 = vmatmul.msk.f32.gmra.mxu3 %vm1115_vm6, %v1096_v5 }
 0x1a4   : > { %1365 = vmatpush.msra.mxu1 %v1950_v37  ;;  %v1477_v37 = vld [vmem:[%s2921_s8 + $0x40] sm:$0xff] }
 0x1a6   : > { %1366 = vmatpush.msra.mxu1 %v1949_v40  ;;  %v1974_v40 = vld [vmem:[%s2921_s8 + $0xb0] sm:$0xff] }
 0x1a8   : > { %1367 = vmatpush.msra.mxu1 %v1948_v42  ;;  %v1973_v42 = vld [vmem:[%s2921_s8 + $0xa8] sm:$0xff] }
 0x1aa   : > { %1368 = vmatpush.msra.mxu1 %v1947_v43  ;;  %v1474_v43 = vld [vmem:[%s2921_s8 + $0x28] sm:$0xff] }
 0x1ac   : > { %1369 = vmatpush.msra.mxu1 %v1946_v44  ;;  %v1972_v44 = vld [vmem:[%s2921_s8 + $0xa0] sm:$0xff] }
 0x1ae   : > { %1370 = vmatpush.msra.mxu1 %v1945_v45  ;;  %v1971_v45 = vld [vmem:[%s2921_s8 + $0x98] sm:$0xff] }
 0x217   : > { %v1139_v46 = vpop.f32.mrf.mxu0  ;;  %v1162_v47 = vpop.f32.mrf.mxu1 }
 0x218   : > { %v1163_v50 = vadd.f32 %v1162_v47, %v1139_v46  ;;  %v1970_v46 = vld [vmem:[%s2921_s8 + $0x90] sm:$0xff]  ;;  %v1473_v47 = vld [vmem:[%s2921_s8 + $0x20] sm:$0xff] }
 0x21e   : > { %v1204_v48 = vpop.f32.mrf.mxu2  ;;  %v1227_v49 = vpop.f32.mrf.mxu3 }
 0x21f   : > { %v1228_v51 = vadd.f32 %v1227_v49, %v1204_v48  ;;  %v1142_v53 = vpop.f32.mrf.mxu0  ;;  %v1165_v54 = vpop.f32.mrf.mxu1  ;;  %v1472_v48 = vld [vmem:[%s2921_s8 + $0x18] sm:$0xff]  ;;  %v1471_v49 = vld [vmem:[%s2921_s8 + $0x10] sm:$0xff] }
 0x220   : > { %v1166_v57 = vadd.f32 %v1165_v54, %v1142_v53  ;;  %v1469_v53 = vld [vmem:[%s2921_s8] sm:$0xff]  ;;  %v1585_v54 = vld [vmem:[#allocation7 + $0x78] sm:$0xff] }
 0x221   : > { %v1233_v52 = vmax.f32 %v1163_v50, %v1228_v51  ;;  %v1969_v50 = vld [vmem:[%s2921_s8 + $0x88] sm:$0xff]  ;;  %1597 = vmatpush.msrb.mxu2 %v1585_v54 }
 0x222   : > { %v1470_v51 = vld [vmem:[%s2921_s8 + $0x8] sm:$0xff] }
 0x223   : > { %1934 = vmatmul.msk.f32.vlgmr.msra.gmra.mxu0 %vm1259_vm7, %v1233_v52  ;;  %v1256_v60 = vrot.slane %v1233_v52, 1  ;;  %v1314_v61 = vrot.slane %v1233_v52, 2  ;;  %v1386_v0 = vrot.slane %v1233_v52, 4  ;;  %v1350_v6 = vrot.slane %v1233_v52, 3  ;;  %v1968_v52 = vld [vmem:[%s2921_s8 + $0x80] sm:$0xff] }
 0x226   : > { %v1207_v55 = vpop.f32.mrf.mxu2  ;;  %v1230_v56 = vpop.f32.mrf.mxu3 }
 0x227   : > { %v1231_v58 = vadd.f32 %v1230_v56, %v1207_v55  ;;  %v1584_v55 = vld [vmem:[#allocation7 + $0x70] sm:$0xff]  ;;  %v1551_v56 = vld [vmem:[#allocation7 + $0x38] sm:$0xff] }
 0x228   : > { %1598 = vmatpush.msrb.mxu2 %v1584_v55  ;;  %v1543_v55 = vld [vmem:[%s2923_s10] sm:$0x1] }
 0x229   : > { %v1234_v59 = vmax.f32 %v1166_v57, %v1231_v58  ;;  %v1550_v57 = vld [vmem:[#allocation7 + $0x30] sm:$0xff]  ;;  %v1583_v58 = vld [vmem:[#allocation7 + $0x68] sm:$0xff] }
 0x22a   : > { %1599 = vmatpush.msrb.mxu2 %v1583_v58 }
 0x22b   : > { %v1257_v62 = vrot.slane %v1234_v59, 1  ;;  %v1315_v63 = vrot.slane %v1234_v59, 2  ;;  %v1387_v1 = vrot.slane %v1234_v59, 4  ;;  %v1351_v5 = vrot.slane %v1234_v59, 3  ;;  %v1549_v59 = vld [vmem:[#allocation7 + $0x28] sm:$0xff] }
 0x22d   : > { %v1258_v2 = vsel %vm567_vm1, %v1256_v60, %v1257_v62  ;;  %v1316_v3 = vsel %vm714_vm3, %v1314_v61, %v1315_v63  ;;  %v1388_v4 = vsel %vm582_vm0, %v1386_v0, %v1387_v1  ;;  %v1352_v7 = vsel %vm801_vm4, %v1350_v6, %v1351_v5  ;;  %v1582_v60 = vld [vmem:[#allocation7 + $0x60] sm:$0xff]  ;;  %v1581_v62 = vld [vmem:[#allocation7 + $0x58] sm:$0xff]  ;;  %v1580_v0 = vld [vmem:[#allocation7 + $0x50] sm:$0xff] }
 0x22e   : > { %1933 = vmatmul.msk.f32.vlgmr.msrb.gmra.mxu1 %vm1259_vm7, %v1258_v2  ;;  %1944 = vmatmul.msk.f32.vlgmr.msrb.gmra.mxu3 %vm1259_vm7, %v1316_v3  ;;  %v1548_v61 = vld [vmem:[#allocation7 + $0x20] sm:$0xff]  ;;  %v1547_v63 = vld [vmem:[#allocation7 + $0x18] sm:$0xff]  ;;  %v1546_v1 = vld [vmem:[#allocation7 + $0x10] sm:$0xff] }
 0x22f   : > { %1964 = vmatmul.msk.f32.vlgmr.msra.gmra.mxu2 %vm1259_vm7, %v1388_v4  ;;  %1564 = vmatpush.msrb.mxu1 %v1551_v56  ;;  %v1579_v2 = vld [vmem:[#allocation7 + $0x48] sm:$0xff]  ;;  %v1578_v4 = vld [vmem:[#allocation7 + $0x40] sm:$0xff]  ;;  %v1651_v5 = vld [vmem:[#allocation7 + $0xf8] sm:$0xff] }
 0x230   : > { %1600 = vmatpush.msrb.mxu2 %v1582_v60  ;;  %v1545_v3 = vld [vmem:[#allocation7 + $0x8] sm:$0xff] }
 0x231   : > { %1565 = vmatpush.msrb.mxu1 %v1550_v57 }
 0x232   : > { %1601 = vmatpush.msrb.mxu2 %v1581_v62 }
 0x233   : > { %1566 = vmatpush.msrb.mxu1 %v1549_v59 }
 0x234   : > { %1602 = vmatpush.msrb.mxu2 %v1580_v0  ;;  %v1720_v0 = vld [vmem:[%s2926_s13 + $0x10] sm:$0xff] }
 0x235   : > { %1567 = vmatpush.msrb.mxu1 %v1548_v61 }
 0x236   : > { %1954 = vmatmul.msk.f32.vlgmr.msra.gmra.mxu1 %vm1259_vm7, %v1352_v7  ;;  %1603 = vmatpush.msrb.mxu2 %v1579_v2  ;;  %v1718_v2 = vld [vmem:[%s2926_s13] sm:$0xff] }
 0x237   : > { %1568 = vmatpush.msrb.mxu1 %v1547_v63 }
 0x238   : > { %1604 = vmatpush.msrb.mxu2 %v1578_v4 }
 0x239   : > { %1569 = vmatpush.msrb.mxu1 %v1546_v1  ;;  %v1719_v1 = vld [vmem:[%s2926_s13 + $0x8] sm:$0xff] }
 0x23a   : > { %1663 = vmatpush.msra.mxu2 %v1651_v5 }
 0x23b   : > { %1570 = vmatpush.msrb.mxu1 %v1545_v3  ;;  %v1692_v3 = vld [vmem:[%s2925_s12] sm:$0x1] }
 0x2a0   : > { %v1301_v9 = vpop.f32.mrf.mxu0 }
 0x2ab   : > { %v1279_v8 = vpop.f32.mrf.mxu1 }
 0x2ac   : > { %v1302_v10 = vadd.f32 %v1301_v9, %v1279_v8  ;;  %v1544_v9 = vld [vmem:[#allocation7] sm:$0xff] }
 0x2ad   : > { %1571 = vmatpush.msrb.mxu1 %v1544_v9 }
 0x2b1   : > { %v1336_v11 = vpop.f32.mrf.mxu3 }
 0x2b2   : > { %v1339_v12 = vadd.f32 %v1336_v11, %v1302_v10  ;;  %v1408_v16 = vpop.f32.mrf.mxu2  ;;  %v1618_v10 = vld [vmem:[#allocation7 + $0xb8] sm:$0xff]  ;;  %v1617_v11 = vld [vmem:[#allocation7 + $0xb0] sm:$0xff] }
 0x2b3   : > { %v1372_v13 = vpop.f32.mrf.mxu1  ;;  %1630 = vmatpush.msra.mxu1 %v1618_v10 }
 0x2b4   : > { %v1375_v14 = vadd.f32 %v1372_v13, %v1339_v12  ;;  %v1650_v12 = vld [vmem:[#allocation7 + $0xf0] sm:$0xff]  ;;  %v1616_v13 = vld [vmem:[#allocation7 + $0xa8] sm:$0xff] }
 0x2b5   : > { %1631 = vmatpush.msra.mxu1 %v1617_v11  ;;  %1664 = vmatpush.msra.mxu2 %v1650_v12 }
 0x2b6   : > { %v1411_v17 = vadd.f32 %v1408_v16, %v1375_v14  ;;  %v1649_v14 = vld [vmem:[#allocation7 + $0xe8] sm:$0xff]  ;;  %v1648_v16 = vld [vmem:[#allocation7 + $0xe0] sm:$0xff] }
 0x2b7   : > { %1632 = vmatpush.msra.mxu1 %v1616_v13  ;;  %1665 = vmatpush.msra.mxu2 %v1649_v14 }
 0x2b8   : > { %v1416_v18 = vadd.f32 %v2075_v15, %v1411_v17  ;;  %v1615_v15 = vld [vmem:[#allocation7 + $0xa0] sm:$0xff]  ;;  %v1614_v17 = vld [vmem:[#allocation7 + $0x98] sm:$0xff] }
 0x2b9   : > { %1633 = vmatpush.msra.mxu1 %v1615_v15  ;;  %1666 = vmatpush.msra.mxu2 %v1648_v16 }
 0x2ba   : > { %v1417_v19 = vmax.f32 %v1416_v18, 0.0  ;;  %v1647_v18 = vld [vmem:[#allocation7 + $0xd8] sm:$0xff] }
 0x2bb   : > { %1634 = vmatpush.msra.mxu1 %v1614_v17  ;;  %1667 = vmatpush.msra.mxu2 %v1647_v18 }
 0x2bc   : > { %1438 = vmatpush.msrb.mxu0 %v1417_v19  ;;  %1463 = vmatpush.msra.mxu3 %v1417_v19  ;;  %v1646_v19 = vld [vmem:[#allocation7 + $0xd0] sm:$0xff] }
 0x2bd   : > { %1967 = vmatmul.msk.f32.vlgmr.msra.gmra.mxu3 %vm1419_vm8, %v1966_v20  ;;  %1965 = vmatmul.msk.f32.vlgmr.msrb.gmra.mxu0 %vm1419_vm8, %v1418_v21  ;;  %v1613_v20 = vld [vmem:[#allocation7 + $0x90] sm:$0xff]  ;;  %v1645_v21 = vld [vmem:[#allocation7 + $0xc8] sm:$0xff] }
 0x2be   : > { %1522 = vmatpush.msrb.mxu3 %v1983_v22  ;;  %1485 = vmatpush.msra.mxu0 %v1484_v23  ;;  %v1612_v22 = vld [vmem:[#allocation7 + $0x88] sm:$0xff]  ;;  %v1644_v23 = vld [vmem:[#allocation7 + $0xc0] sm:$0xff] }
 0x2bf   : > { %1635 = vmatpush.msra.mxu1 %v1613_v20  ;;  %1668 = vmatpush.msra.mxu2 %v1646_v19 }
 0x2c0   : > { %1523 = vmatpush.msrb.mxu3 %v1982_v24  ;;  %1486 = vmatpush.msra.mxu0 %v1483_v25  ;;  %v1611_v24 = vld [vmem:[#allocation7 + $0x80] sm:$0xff]  ;;  %v1691_v25 = vld [vmem:[%s2924_s11 + $0x70] sm:$0xff] }
 0x2c1   : > { %1636 = vmatpush.msra.mxu1 %v1612_v22  ;;  %1669 = vmatpush.msra.mxu2 %v1645_v21 }
 0x2c2   : > { %1524 = vmatpush.msrb.mxu3 %v1981_v26  ;;  %1487 = vmatpush.msra.mxu0 %v1482_v27  ;;  %v1690_v26 = vld [vmem:[%s2924_s11 + $0x68] sm:$0xff]  ;;  %v1689_v27 = vld [vmem:[%s2924_s11 + $0x60] sm:$0xff] }
 0x2c3   : > { %1637 = vmatpush.msra.mxu1 %v1611_v24  ;;  %1670 = vmatpush.msra.mxu2 %v1644_v23 }
 0x2c4   : > { %1525 = vmatpush.msrb.mxu3 %v1980_v28  ;;  %1488 = vmatpush.msra.mxu0 %v1481_v29  ;;  %v1688_v28 = vld [vmem:[%s2924_s11 + $0x58] sm:$0xff]  ;;  %v1687_v29 = vld [vmem:[%s2924_s11 + $0x50] sm:$0xff] }
 0x2c6   : > { %1526 = vmatpush.msrb.mxu3 %v1979_v30  ;;  %1489 = vmatpush.msra.mxu0 %v1480_v31  ;;  %v1686_v30 = vld [vmem:[%s2924_s11 + $0x48] sm:$0xff]  ;;  %v1685_v31 = vld [vmem:[%s2924_s11 + $0x40] sm:$0xff] }
 0x2c8   : > { %1527 = vmatpush.msrb.mxu3 %v1978_v32  ;;  %1490 = vmatpush.msra.mxu0 %v1479_v33 }
 0x2ca   : > { %1528 = vmatpush.msrb.mxu3 %v1977_v34  ;;  %1491 = vmatpush.msra.mxu0 %v1478_v35 }
 0x2cc   : > { %1529 = vmatpush.msrb.mxu3 %v1976_v36  ;;  %1492 = vmatpush.msra.mxu0 %v1477_v37 }
 0x2ce   : > { %1530 = vmatpush.msrb.mxu3 %v1975_v38  ;;  %1493 = vmatpush.msra.mxu0 %v1476_v39  ;;  %v1684_v38 = vld [vmem:[%s2924_s11 + $0x38] sm:$0xff]  ;;  %v1683_v39 = vld [vmem:[%s2924_s11 + $0x30] sm:$0xff] }
 0x2d0   : > { %1531 = vmatpush.msrb.mxu3 %v1974_v40  ;;  %1494 = vmatpush.msra.mxu0 %v1475_v41  ;;  %v1682_v40 = vld [vmem:[%s2924_s11 + $0x28] sm:$0xff]  ;;  %v1681_v41 = vld [vmem:[%s2924_s11 + $0x20] sm:$0xff] }
 0x2d2   : > { %1532 = vmatpush.msrb.mxu3 %v1973_v42  ;;  %1495 = vmatpush.msra.mxu0 %v1474_v43  ;;  %v1680_v42 = vld [vmem:[%s2924_s11 + $0x18] sm:$0xff]  ;;  %v1679_v43 = vld [vmem:[%s2924_s11 + $0x10] sm:$0xff] }
 0x2d4   : > { %1533 = vmatpush.msrb.mxu3 %v1972_v44  ;;  %1496 = vmatpush.msra.mxu0 %v1473_v47  ;;  %v1678_v44 = vld [vmem:[%s2924_s11 + $0x8] sm:$0xff] }
 0x2d5   : > { %v1727_v47 = vld [vmem:[%s2926_s13 + $0x48] sm:$0xff] }
 0x2d6   : > { %1534 = vmatpush.msrb.mxu3 %v1971_v45  ;;  %1497 = vmatpush.msra.mxu0 %v1472_v48  ;;  %v1677_v45 = vld [vmem:[%s2924_s11] sm:$0xff] }
 0x2d7   : > { %v1726_v48 = vld [vmem:[%s2926_s13 + $0x40] sm:$0xff] }
 0x2d8   : > { %1535 = vmatpush.msrb.mxu3 %v1970_v46  ;;  %1498 = vmatpush.msra.mxu0 %v1471_v49  ;;  %v1728_v46 = vld [vmem:[%s2926_s13 + $0x50] sm:$0xf]  ;;  %v1725_v49 = vld [vmem:[%s2926_s13 + $0x38] sm:$0xff] }
 0x2da   : > { %1536 = vmatpush.msrb.mxu3 %v1969_v50  ;;  %1499 = vmatpush.msra.mxu0 %v1470_v51  ;;  %v1724_v50 = vld [vmem:[%s2926_s13 + $0x30] sm:$0xff]  ;;  %v1723_v51 = vld [vmem:[%s2926_s13 + $0x28] sm:$0xff] }
 0x2dc   : > { %1537 = vmatpush.msrb.mxu3 %v1968_v52  ;;  %1500 = vmatpush.msra.mxu0 %v1469_v53  ;;  %v1722_v52 = vld [vmem:[%s2926_s13 + $0x20] sm:$0xff]  ;;  %v1721_v53 = vld [vmem:[%s2926_s13 + $0x18] sm:$0xff] }
 0x2de   : > { %1698 = vmatpush.msrb.mxu0 %v1691_v25  ;;  %1989 = vmatpush.msk.msra.mxu3 %vm582_vm0, %v1728_v46 }
 0x2e0   : > { %1699 = vmatpush.msrb.mxu0 %v1690_v26  ;;  %1743 = vmatpush.msra.mxu3 %v1727_v47 }
 0x2e2   : > { %1700 = vmatpush.msrb.mxu0 %v1689_v27  ;;  %1744 = vmatpush.msra.mxu3 %v1726_v48 }
 0x2e4   : > { %1701 = vmatpush.msrb.mxu0 %v1688_v28  ;;  %1745 = vmatpush.msra.mxu3 %v1725_v49 }
 0x2e6   : > { %1702 = vmatpush.msrb.mxu0 %v1687_v29  ;;  %1746 = vmatpush.msra.mxu3 %v1724_v50 }
 0x2e8   : > { %1703 = vmatpush.msrb.mxu0 %v1686_v30  ;;  %1747 = vmatpush.msra.mxu3 %v1723_v51 }
 0x2ea   : > { %1704 = vmatpush.msrb.mxu0 %v1685_v31  ;;  %1748 = vmatpush.msra.mxu3 %v1722_v52 }
 0x2ec   : > { %1705 = vmatpush.msrb.mxu0 %v1684_v38  ;;  %1749 = vmatpush.msra.mxu3 %v1721_v53 }
 0x2ee   : > { %1706 = vmatpush.msrb.mxu0 %v1683_v39  ;;  %1750 = vmatpush.msra.mxu3 %v1720_v0 }
 0x2f0   : > { %1707 = vmatpush.msrb.mxu0 %v1682_v40  ;;  %1751 = vmatpush.msra.mxu3 %v1719_v1 }
 0x2f2   : > { %1708 = vmatpush.msrb.mxu0 %v1681_v41  ;;  %1752 = vmatpush.msra.mxu3 %v1718_v2 }
 0x2f4   : > { %1709 = vmatpush.msrb.mxu0 %v1680_v42 }
 0x2f6   : > { %1710 = vmatpush.msrb.mxu0 %v1679_v43 }
 0x2f8   : > { %1711 = vmatpush.msrb.mxu0 %v1678_v44 }
 0x2fa   : > { %1712 = vmatpush.msrb.mxu0 %v1677_v45 }
 0x33a   : > { %v1440_v6 = vpop.f32.mrf.mxu0 }
 0x340   : > { %v1465_v7 = vpop.f32.mrf.mxu3 }
 0x341   : > { %v1468_v8 = vmax.f32 %v1440_v6, %v1465_v7  ;;  %v1729_v7 = vld [vmem:[%s2953_s25] sm:$0x1] }
 0x343   : > { %1538 = vmatmul.f32.vlgmr.msrb.gmra.mxu3 %v1468_v8  ;;  %1501 = vmatmul.f32.vlgmr.msra.gmra.mxu0 %v1468_v8 }
 0x3c0   : > { %v1502_v32 = vpop.f32.mrf.mxu0 }
 0x3c6   : > { %v1539_v33 = vpop.f32.mrf.mxu3 }
 0x3c7   : > { %v1542_v34 = vmax.f32 %v1502_v32, %v1539_v33 }
 0x3c9   : > { %v1586_v35 = vrot.slane %v1542_v34, 1  ;;  %1984 = vmatmul.msk.f32.vlgmr.msrb.gmra.mxu1 %vm1552_vm9, %v1542_v34  ;;  %v1619_v36 = vrot.slane %v1542_v34, 2  ;;  %v1652_v37 = vrot.slane %v1542_v34, 3 }
 0x3cb   : > { %1985 = vmatmul.msk.f32.vlgmr.msrb.gmra.mxu2 %vm1552_vm9, %v1586_v35 }
 0x3d1   : > { %1986 = vmatmul.msk.f32.vlgmr.msra.gmra.mxu1 %vm1552_vm9, %v1619_v36 }
 0x3d3   : > { %1987 = vmatmul.msk.f32.vlgmr.msra.gmra.mxu2 %vm1552_vm9, %v1652_v37 }
 0x446   : > { %v1573_v54 = vpop.f32.mrf.mxu1 }
 0x447   : > { %v1576_v57 = vadd.f32 %v1573_v54, %v1543_v55 }
 0x44e   : > { %v1606_v56 = vpop.f32.mrf.mxu2  ;;  %v1639_v59 = vpop.f32.mrf.mxu1 }
 0x44f   : > { %v1609_v58 = vadd.f32 %v1606_v56, %v1576_v57 }
 0x451   : > { %v1642_v60 = vadd.f32 %v1639_v59, %v1609_v58 }
 0x456   : > { %v1672_v61 = vpop.f32.mrf.mxu2 }
 0x457   : > { %v1675_v62 = vadd.f32 %v1672_v61, %v1642_v60 }
 0x459   : > { %v1676_v63 = vmax.f32 %v1675_v62, 0.0 }
 0x45b   : > { %1988 = vmatmul.msk.f32.vlgmr.msrb.gmra.mxu0 %vm1693_vm10, %v1676_v63 }
 0x4d8   : > { %v1714_v4 = vpop.f32.mrf.mxu0 }
 0x4d9   : > { %v1715_v5 = vadd.f32 %v1714_v4, %v1692_v3 }
 0x4db   : > { %v1717_v6 = vmax.f32 %v1715_v5, 0.0 }
 0x4dd   : > { %1990 = vmatmul.msk.f32.vlgmr.msra.gmra.mxu3 %vm1730_vm11, %v1717_v6 }
 0x560   : > { %v1754_v8 = vpop.f32.mrf.mxu3 }
 0x561   : > { %v1755_v9 = vadd.f32 %v1754_v8, %v1729_v7 }
 0x563   : > { %1758 = vst.msk [vmem:[%s536_s24] sm:$0x1] %vm1757_vm12, %v1755_v9 }
 0x564   : > { %2193 = shalt.err (!%p2190_p8)
}
 0x565   : > { %2013 = dma.vmem_to_hbm [thread:$0]  (%p2363_p5), %s1771_s6, 16, %s1773_s1, %s1760_s14  }
 0x566 PF: > { %s2955_s29 = sld [smem:[#allocation14_spill]] }
 0x567   : > { %s2956_s26 = sld [smem:[#allocation12_spill]] }
 0x56c   : > { %p2035_p9 = scmp.ge.s32.totalorder %s2955_s29, 2 }
 0x56d   : > { %s1784_s17 = sand.u32 1, %s2956_s26  }
 0x56e   : > { %p2026_p10 = pnand %p2035_p9, %p2367_p6  ;;  %s1785_s25 = scalar_lea.sflag [#allocation4], %s1784_s17 }
 0x570   : > { %p2027_p11 = pneg %p2026_p10 }
 0x572   : > { %2219 = dma.done.wait (%p2027_p11), %s1785_s25, 16  }
 0x573   : > { %2221 = vsyncadd (%p2027_p11), %s1785_s25, 4294967280  ;;  %s2958_s21 = sld [smem:[#allocation15_spill]]  ;;  %s2961_s18 = smov %s2228_s19 }
 0x574   : > { %s2959_s24 = sld [smem:[#allocation13_spill]] }
 0x575   : > { %s2960_s20 = sld [smem:[#allocation16_spill]] }
 0x579   : > { %p27_p12 = scmp.ge.s32.totalorder %s2958_s21, 4  }
 0x57a   : > { %s2962_s19 = smov %s2959_s24 }
 0x57b   :  { %29 = sbr.rel (!%p27_p12) target bundleno = 9 (0x9), region = 143 }
 0x580   :  { %1790 = vsyncpa [#allocation3], 1 }
 0x581   :  { %1792 = vsyncpa [#allocation3 + $0x1], 1 }
 0x582   :  { %1793 = vsyncpa [#allocation6], 1 }
 0x583   :  { %1794 = vsyncpa [#allocation4], 1 }
 0x584   :  { %1796 = vsyncpa [#allocation4 + $0x1], 1 }

</bundles_post_ra>
